<compile_context>
chip_gen: v7x
topology: tpu7x:2x2x1
jax: 0.10.0
libtpu: 0.0.40
codegen_flags: <defaults>
</compile_context>

<pallas_src>
import math
import functools

import jax
import jax.numpy as jnp
from jax.experimental import pallas as pl
from jax.experimental.pallas import tpu as pltpu


def mhca_kernel(item_ref, embed_ref, mask_ref,
                wq_ref, bq_ref, wk_ref, bk_ref, wv_ref, bv_ref,
                wd_ref, bd_ref, gamma_ref, beta_ref,
                out_ref,
                *, batch_tile, seq_len, n_heads, head_size, ln_eps):
    f32 = jnp.float32
    bf16 = jnp.bfloat16
    hidden_size = n_heads * head_size
    rows = batch_tile * seq_len

    x_item = item_ref[...]      # [rows, H] bf16
    x_embed = embed_ref[...]    # [rows, H] bf16

    # Q/K from item_seq, V from embed_seq: bf16 MXU operands, f32 accumulation.
    # The 1/sqrt(head_size) score scale is pre-folded into wq / bq.
    q = jnp.dot(x_item, wq_ref[...], preferred_element_type=f32) + bq_ref[0]
    k = jnp.dot(x_item, wk_ref[...], preferred_element_type=f32) + bk_ref[0]
    v = jnp.dot(x_embed, wv_ref[...], preferred_element_type=f32) + bv_ref[0]

    # Sublane-only reshape: [rows, H] -> [Bt, S, H]; heads stay on the lane axis.
    q3 = q.reshape(batch_tile, seq_len, hidden_size)
    k3 = k.reshape(batch_tile, seq_len, hidden_size)
    v3 = v.reshape(batch_tile, seq_len, hidden_size)

    mask = mask_ref[...]        # [Bt, 1, S] additive key mask, bcast over queries

    # Per-head attention, batched over the batch tile (single einsum per op).
    # Each head's context never hits a lane-partial store: its dense-projection
    # contribution (ctx_h @ Wd[h]) is accumulated straight into [rows, H].
    hidden = None
    for h in range(n_heads):
        lo = h * head_size
        qh = q3[:, :, lo:lo + head_size].astype(bf16)   # [Bt, S, hd]
        kh = k3[:, :, lo:lo + head_size].astype(bf16)   # [Bt, S, hd]
        vh = v3[:, :, lo:lo + head_size].astype(bf16)   # [Bt, S, hd]

        scores = jnp.einsum('bqd,bkd->bqk', qh, kh,
                            preferred_element_type=f32) + mask      # [Bt, S, S]

        m = jnp.max(scores, axis=-1, keepdims=True)
        e = jnp.exp(scores - m)
        denom = jnp.sum(e, axis=-1, keepdims=True)
        probs = (e * pl.reciprocal(denom, approx=True)).astype(bf16)

        ctx = jnp.einsum('bqk,bkd->bqd', probs, vh,
                         preferred_element_type=f32)                # [Bt, S, hd]
        ctx2 = ctx.reshape(rows, head_size).astype(bf16)

        # wd_ref is [n_heads, head_size, H]: wd_ref[h] == dense-weight rows of head h.
        contrib = jnp.dot(ctx2, wd_ref[h], preferred_element_type=f32)
        hidden = contrib if hidden is None else hidden + contrib

    # Dense bias + residual (embed_seq) + LayerNorm, all in f32.
    x = hidden + bd_ref[0] + x_embed.astype(f32)
    mean = jnp.mean(x, axis=-1, keepdims=True)
    centered = x - mean
    var = jnp.mean(centered * centered, axis=-1, keepdims=True)
    normed = centered * jax.lax.rsqrt(var + ln_eps)
    out_ref[...] = (normed * gamma_ref[0] + beta_ref[0]).astype(out_ref.dtype)


def _vmem_limit_bytes():
    """Per-TensorCore VMEM budget: capacity minus headroom for compiler scratch."""
    cap = 64 * 1024 * 1024                      # conservative default (v7x-sized)
    try:
        cap = int(pltpu.get_tpu_info().vmem_capacity_bytes)
    except Exception:
        pass
    return max(32 * 1024 * 1024, min(cap - 16 * 1024 * 1024, 112 * 1024 * 1024))


def _pick_batch_tile(B, S, H, vmem_budget, *, target_rows=512):
    """Pick Bt | B so the (Bt*S, H) row slab feeds the MXU, respects the (8,128)
    sublane constraint whenever Bt < B, and stays inside the VMEM budget."""
    # Rough per-row VMEM bytes: 2 bf16 input slabs (x2 buffers) + f32 output (x2)
    # + q/k/v/hidden f32 temps + per-head [S, S] scores.
    per_row = (2 * 2 * 2 * H) + (2 * 4 * H) + (4 * 4 * H) + 4 * S
    max_rows = max(8, (vmem_budget // 2) // max(per_row, 1))

    candidates = [bt for bt in range(1, B + 1)
                  if B % bt == 0 and (bt == B or (bt * S) % 8 == 0)]
    fitting = [bt for bt in candidates if bt * S <= max_rows] or candidates[:1]
    over = [bt for bt in fitting if bt * S >= target_rows]
    # Smallest tile that already reaches the MXU target keeps more grid steps
    # (megacore / 2-TC sharding); otherwise take the largest fitting tile.
    return min(over) if over else max(fitting)


def multi_head_cross_attention(item_seq, embed_seq, attention_mask, params,
                               *, n_heads, layer_norm_eps):
    """attention_mask: additive key mask of shape [B, 1, S] (broadcast over heads
    and query positions, like the standard extended attention mask)."""
    B, S, H = item_seq.shape
    assert H % n_heads == 0
    head_size = H // n_heads
    assert attention_mask.shape == (B, 1, S)

    f32, bf16 = jnp.float32, jnp.bfloat16
    vmem_limit = _vmem_limit_bytes()
    Bt = _pick_batch_tile(B, S, H, vmem_limit)
    rows = Bt * S

    # Fold 1/sqrt(head_size) into the Q projection (exactly equivalent); cast all
    # MXU weight operands to bf16 (v5e/v6e/v7x MXUs are bf16-native).
    inv_sqrt_d = 1.0 / math.sqrt(head_size)
    wq = (params["wq"] * inv_sqrt_d).astype(bf16)
    bq = (params["bq"] * inv_sqrt_d).astype(f32)
    wk = params["wk"].astype(bf16)
    wv = params["wv"].astype(bf16)
    # Dense weight as [n_heads, head_size, H]: each head's rows are a leading-axis
    # slab, so the kernel indexes wd_ref[h] instead of sub-lane/sublane slicing.
    wd = params["wd"].reshape(n_heads, head_size, H).astype(bf16)

    # Flatten (B, S, H) -> (B*S, H) so projection matmuls see a large MXU M dim;
    # bf16 activation slabs halve HBM traffic and VMEM.
    item2 = item_seq.reshape(B * S, H).astype(bf16)
    embed2 = embed_seq.reshape(B * S, H).astype(bf16)

    kern = functools.partial(mhca_kernel, batch_tile=Bt, seq_len=S,
                             n_heads=n_heads, head_size=head_size,
                             ln_eps=layer_norm_eps)

    cost = pl.CostEstimate(
        flops=2 * B * S * H * H * 4 + 2 * B * n_heads * S * S * head_size * 2,
        transcendentals=B * n_heads * S * S,
        bytes_accessed=(2 * B * S * H * 2) + (B * S * H * 4) + (B * S * 4)
                       + (4 * H * H * 2) + (6 * H * 4),
    )

    args = (item2, embed2, attention_mask.astype(f32),
            wq, bq,
            wk, params["bk"].astype(f32),
            wv, params["bv"].astype(f32),
            wd, params["bd"].astype(f32),
            params["gamma"].astype(f32), params["beta"].astype(f32))

    def build(single_buffer_weights):
        const_kw = ({"pipeline_mode": pl.Buffered(1)}
                    if single_buffer_weights else {})
        row_spec = pl.BlockSpec((rows, H), lambda i: (i, 0))
        mask_spec = pl.BlockSpec((Bt, 1, S), lambda i: (i, 0, 0))
        w_spec = pl.BlockSpec((H, H), lambda i: (0, 0), **const_kw)
        wd_spec = pl.BlockSpec((n_heads, head_size, H),
                               lambda i: (0, 0, 0), **const_kw)
        vec_spec = pl.BlockSpec((1, H), lambda i: (0, 0), **const_kw)
        return pl.pallas_call(
            kern,
            out_shape=jax.ShapeDtypeStruct((B * S, H), item_seq.dtype),
            grid_spec=pltpu.PrefetchScalarGridSpec(
                num_scalar_prefetch=0,
                grid=(B // Bt,),
                in_specs=[
                    row_spec,            # item_seq (flattened, bf16)
                    row_spec,            # embed_seq (flattened, bf16)
                    mask_spec,           # additive key mask [B, 1, S]
                    w_spec, vec_spec,    # Wq (pre-scaled), bq (pre-scaled)
                    w_spec, vec_spec,    # Wk, bk
                    w_spec, vec_spec,    # Wv, bv
                    wd_spec, vec_spec,   # Wd [nh, hd, H], bd
                    vec_spec, vec_spec,  # gamma, beta
                ],
                out_specs=row_spec),
            compiler_params=pltpu.CompilerParams(
                dimension_semantics=("parallel",),
                vmem_limit_bytes=vmem_limit),
            cost_estimate=cost)

    try:
        out_flat = build(True)(*args)
    except Exception:
        # pipeline_mode=pl.Buffered(1) (single-buffered resident weights) is a
        # pure VMEM optimization; fall back to default double buffering if this
        # jax/libtpu build does not support it.
        out_flat = build(False)(*args)

    return out_flat.reshape(B, S, H)


def reference_forward(item_seq, embed_seq, attention_mask, params,
                      *, n_heads, layer_norm_eps):
    """Pure-JAX f32 reference mirroring the PyTorch module (eval mode)."""
    B, S, H = item_seq.shape
    hd = H // n_heads

    def proj(x, w, b):
        return jnp.einsum('bsh,ho->bso', x, w) + b[0]

    q = proj(item_seq, params["wq"], params["bq"])
    k = proj(item_seq, params["wk"], params["bk"])
    v = proj(embed_seq, params["wv"], params["bv"])

    def split(x):  # [B,S,H] -> [B,nh,S,hd]
        return x.reshape(B, S, n_heads, hd).transpose(0, 2, 1, 3)

    qh, kh, vh = split(q), split(k), split(v)
    scores = jnp.einsum('bhqd,bhkd->bhqk', qh, kh) / math.sqrt(hd)
    scores = scores + attention_mask[:, None, :, :]   # [B,1,1,S] broadcast
    probs = jax.nn.softmax(scores, axis=-1)
    ctx = jnp.einsum('bhqk,bhkd->bhqd', probs, vh)
    ctx = ctx.transpose(0, 2, 1, 3).reshape(B, S, H)
    hidden = jnp.einsum('bsh,ho->bso', ctx, params["wd"]) + params["bd"][0]
    x = hidden + embed_seq
    mean = jnp.mean(x, axis=-1, keepdims=True)
    var = jnp.mean((x - mean) ** 2, axis=-1, keepdims=True)
    normed = (x - mean) / jnp.sqrt(var + layer_norm_eps)
    return normed * params["gamma"][0] + params["beta"][0]


if __name__ == "__main__":
    B, S, H = 2, 8, 32
    N_HEADS = 2
    LN_EPS = 1e-12

    key = jax.random.PRNGKey(0)
    keys = jax.random.split(key, 12)

    scale = 0.1
    params = {
        # Linear weights stored pre-transposed: [in, out]
        "wq": scale * jax.random.normal(keys[0], (H, H), jnp.float32),
        "bq": scale * jax.random.normal(keys[1], (1, H), jnp.float32),
        "wk": scale * jax.random.normal(keys[2], (H, H), jnp.float32),
        "bk": scale * jax.random.normal(keys[3], (1, H), jnp.float32),
        "wv": scale * jax.random.normal(keys[4], (H, H), jnp.float32),
        "bv": scale * jax.random.normal(keys[5], (1, H), jnp.float32),
        "wd": scale * jax.random.normal(keys[6], (H, H), jnp.float32),
        "bd": scale * jax.random.normal(keys[7], (1, H), jnp.float32),
        "gamma": jnp.ones((1, H), jnp.float32),
        "beta": jnp.zeros((1, H), jnp.float32),
    }

    item_seq = jax.random.normal(keys[8], (B, S, H), jnp.float32)
    embed_seq = jax.random.normal(keys[9], (B, S, H), jnp.float32)
    # Standard extended additive KEY mask: 0 = attend, -10000 = masked. [B,1,S]
    keep = (jax.random.uniform(keys[10], (B, 1, S)) > 0.2).astype(jnp.float32)
    attention_mask = (1.0 - keep) * -10000.0

    out = multi_head_cross_attention(item_seq, embed_seq, attention_mask, params,
                                     n_heads=N_HEADS, layer_norm_eps=LN_EPS)
    out = jax.block_until_ready(out)

    ref = reference_forward(item_seq, embed_seq, attention_mask, params,
                            n_heads=N_HEADS, layer_norm_eps=LN_EPS)
    # Tolerance accounts for bf16 MXU operands + pl.reciprocal(approx=True);
    # reference is full f32.
    max_diff = jnp.max(jnp.abs(out - ref))
    assert jnp.allclose(out, ref, atol=3e-2, rtol=3e-2), \
        f"max abs diff = {max_diff}"

    print("KERNEL_OK")
</pallas_src>

<mosaic_0001>
module attributes {stable_mosaic.version = 11 : i64} {
  func.func @mhca_kernel(%arg0: i32, %arg1: memref<16x32xbf16, #tpu.memory_space<vmem>>, %arg2: memref<16x32xbf16, #tpu.memory_space<vmem>>, %arg3: memref<2x1x8xf32, #tpu.memory_space<vmem>>, %arg4: memref<32x32xbf16, #tpu.memory_space<vmem>>, %arg5: memref<1x32xf32, #tpu.memory_space<vmem>>, %arg6: memref<32x32xbf16, #tpu.memory_space<vmem>>, %arg7: memref<1x32xf32, #tpu.memory_space<vmem>>, %arg8: memref<32x32xbf16, #tpu.memory_space<vmem>>, %arg9: memref<1x32xf32, #tpu.memory_space<vmem>>, %arg10: memref<2x16x32xbf16, #tpu.memory_space<vmem>>, %arg11: memref<1x32xf32, #tpu.memory_space<vmem>>, %arg12: memref<1x32xf32, #tpu.memory_space<vmem>>, %arg13: memref<1x32xf32, #tpu.memory_space<vmem>>, %arg14: memref<16x32xf32, #tpu.memory_space<vmem>>) attributes {dimension_semantics = [#tpu.dimension_semantics<parallel>], iteration_bounds = array<i64: 1>, scalar_prefetch = 0 : i64, scratch_operands = 0 : i64, tpu.core_type = #tpu.core_type<tc>, window_params = [{transform_indices = @transform_0, window_bounds = array<i64: 16, 32>}, {transform_indices = @transform_1, window_bounds = array<i64: 16, 32>}, {transform_indices = @transform_2, window_bounds = array<i64: 2, 1, 8>}, {pipeline_mode = #tpu.pipeline_mode<synchronous>, transform_indices = @transform_3, window_bounds = array<i64: 32, 32>}, {pipeline_mode = #tpu.pipeline_mode<synchronous>, transform_indices = @transform_4, window_bounds = array<i64: 1, 32>}, {pipeline_mode = #tpu.pipeline_mode<synchronous>, transform_indices = @transform_5, window_bounds = array<i64: 32, 32>}, {pipeline_mode = #tpu.pipeline_mode<synchronous>, transform_indices = @transform_6, window_bounds = array<i64: 1, 32>}, {pipeline_mode = #tpu.pipeline_mode<synchronous>, transform_indices = @transform_7, window_bounds = array<i64: 32, 32>}, {pipeline_mode = #tpu.pipeline_mode<synchronous>, transform_indices = @transform_8, window_bounds = array<i64: 1, 32>}, {pipeline_mode = #tpu.pipeline_mode<synchronous>, transform_indices = @transform_9, window_bounds = array<i64: 2, 16, 32>}, {pipeline_mode = #tpu.pipeline_mode<synchronous>, transform_indices = @transform_10, window_bounds = array<i64: 1, 32>}, {pipeline_mode = #tpu.pipeline_mode<synchronous>, transform_indices = @transform_11, window_bounds = array<i64: 1, 32>}, {pipeline_mode = #tpu.pipeline_mode<synchronous>, transform_indices = @transform_12, window_bounds = array<i64: 1, 32>}, {transform_indices = @transform_13, window_bounds = array<i64: 16, 32>}]} {
    %c0 = arith.constant 0 : index
    %c0_0 = arith.constant 0 : index
    %0 = vector.load %arg1[%c0, %c0_0] : memref<16x32xbf16, #tpu.memory_space<vmem>>, vector<16x32xbf16>
    %c0_1 = arith.constant 0 : index
    %c0_2 = arith.constant 0 : index
    %1 = vector.load %arg2[%c0_1, %c0_2] : memref<16x32xbf16, #tpu.memory_space<vmem>>, vector<16x32xbf16>
    %c0_3 = arith.constant 0 : index
    %c0_4 = arith.constant 0 : index
    %2 = vector.load %arg4[%c0_3, %c0_4] : memref<32x32xbf16, #tpu.memory_space<vmem>>, vector<32x32xbf16>
    %cst = arith.constant dense<0.000000e+00> : vector<16x32xf32>
    %3 = tpu.matmul %0, %2, %cst {dimension_numbers = #tpu.dot_dimension_numbers<[1], [0], [0], [1], [0, 0, 1, 1], [], []>} : vector<16x32xbf16>, vector<32x32xbf16>, vector<16x32xf32> -> vector<16x32xf32>
    %c0_5 = arith.constant 0 : index
    %c0_6 = arith.constant 0 : index
    %4 = vector.load %arg5[%c0_5, %c0_6] : memref<1x32xf32, #tpu.memory_space<vmem>>, vector<1x32xf32>
    %5 = vector.shape_cast %4 : vector<1x32xf32> to vector<32xf32>
    %6 = vector.shape_cast %5 : vector<32xf32> to vector<1x32xf32>
    %7 = vector.broadcast %6 : vector<1x32xf32> to vector<16x32xf32>
    %8 = arith.addf %3, %7 : vector<16x32xf32>
    %c0_7 = arith.constant 0 : index
    %c0_8 = arith.constant 0 : index
    %9 = vector.load %arg6[%c0_7, %c0_8] : memref<32x32xbf16, #tpu.memory_space<vmem>>, vector<32x32xbf16>
    %cst_9 = arith.constant dense<0.000000e+00> : vector<16x32xf32>
    %10 = tpu.matmul %0, %9, %cst_9 {dimension_numbers = #tpu.dot_dimension_numbers<[1], [0], [0], [1], [0, 0, 1, 1], [], []>} : vector<16x32xbf16>, vector<32x32xbf16>, vector<16x32xf32> -> vector<16x32xf32>
    %c0_10 = arith.constant 0 : index
    %c0_11 = arith.constant 0 : index
    %11 = vector.load %arg7[%c0_10, %c0_11] : memref<1x32xf32, #tpu.memory_space<vmem>>, vector<1x32xf32>
    %12 = vector.shape_cast %11 : vector<1x32xf32> to vector<32xf32>
    %13 = vector.shape_cast %12 : vector<32xf32> to vector<1x32xf32>
    %14 = vector.broadcast %13 : vector<1x32xf32> to vector<16x32xf32>
    %15 = arith.addf %10, %14 : vector<16x32xf32>
    %c0_12 = arith.constant 0 : index
    %c0_13 = arith.constant 0 : index
    %16 = vector.load %arg8[%c0_12, %c0_13] : memref<32x32xbf16, #tpu.memory_space<vmem>>, vector<32x32xbf16>
    %cst_14 = arith.constant dense<0.000000e+00> : vector<16x32xf32>
    %17 = tpu.matmul %1, %16, %cst_14 {dimension_numbers = #tpu.dot_dimension_numbers<[1], [0], [0], [1], [0, 0, 1, 1], [], []>} : vector<16x32xbf16>, vector<32x32xbf16>, vector<16x32xf32> -> vector<16x32xf32>
    %c0_15 = arith.constant 0 : index
    %c0_16 = arith.constant 0 : index
    %18 = vector.load %arg9[%c0_15, %c0_16] : memref<1x32xf32, #tpu.memory_space<vmem>>, vector<1x32xf32>
    %19 = vector.shape_cast %18 : vector<1x32xf32> to vector<32xf32>
    %20 = vector.shape_cast %19 : vector<32xf32> to vector<1x32xf32>
    %21 = vector.broadcast %20 : vector<1x32xf32> to vector<16x32xf32>
    %22 = arith.addf %17, %21 : vector<16x32xf32>
    %23 = vector.shape_cast %8 : vector<16x32xf32> to vector<2x8x32xf32>
    %24 = vector.shape_cast %15 : vector<16x32xf32> to vector<2x8x32xf32>
    %25 = vector.shape_cast %22 : vector<16x32xf32> to vector<2x8x32xf32>
    %c0_17 = arith.constant 0 : index
    %c0_18 = arith.constant 0 : index
    %c0_19 = arith.constant 0 : index
    %26 = vector.load %arg3[%c0_17, %c0_18, %c0_19] : memref<2x1x8xf32, #tpu.memory_space<vmem>>, vector<2x1x8xf32>
    %27 = vector.extract_strided_slice %23 {offsets = [0, 0, 0], sizes = [2, 8, 16], strides = [1, 1, 1]} : vector<2x8x32xf32> to vector<2x8x16xf32>
    %28 = arith.truncf %27 : vector<2x8x16xf32> to vector<2x8x16xbf16>
    %29 = vector.extract_strided_slice %24 {offsets = [0, 0, 0], sizes = [2, 8, 16], strides = [1, 1, 1]} : vector<2x8x32xf32> to vector<2x8x16xf32>
    %30 = arith.truncf %29 : vector<2x8x16xf32> to vector<2x8x16xbf16>
    %31 = vector.extract_strided_slice %25 {offsets = [0, 0, 0], sizes = [2, 8, 16], strides = [1, 1, 1]} : vector<2x8x32xf32> to vector<2x8x16xf32>
    %32 = arith.truncf %31 : vector<2x8x16xf32> to vector<2x8x16xbf16>
    "tpu.trace_start"() <{level = 10 : i32, message = "bqd,bkd->bqk"}> : () -> ()
    %cst_20 = arith.constant dense<0.000000e+00> : vector<2x8x8xf32>
    %33 = tpu.matmul %28, %30, %cst_20 {dimension_numbers = #tpu.dot_dimension_numbers<[2], [2], [1], [1], [0, 0, 0, 1, 1, 1], [0], [0]>} : vector<2x8x16xbf16>, vector<2x8x16xbf16>, vector<2x8x8xf32> -> vector<2x8x8xf32>
    "tpu.trace_stop"() : () -> ()
    %34 = vector.broadcast %26 : vector<2x1x8xf32> to vector<2x8x8xf32>
    %35 = arith.addf %33, %34 : vector<2x8x8xf32>
    %cst_21 = arith.constant dense<0xFF800000> : vector<2x8xf32>
    %36 = vector.multi_reduction <maximumf>, %35, %cst_21 [2] : vector<2x8x8xf32> to vector<2x8xf32>
    %37 = vector.shape_cast %36 : vector<2x8xf32> to vector<2x8x1xf32>
    %38 = vector.broadcast %37 : vector<2x8x1xf32> to vector<2x8x8xf32>
    %39 = arith.subf %35, %38 : vector<2x8x8xf32>
    %40 = math.exp %39 : vector<2x8x8xf32>
    %cst_22 = arith.constant dense<0.000000e+00> : vector<2x8xf32>
    %41 = vector.multi_reduction <add>, %40, %cst_22 [2] : vector<2x8x8xf32> to vector<2x8xf32>
    %42 = vector.shape_cast %41 : vector<2x8xf32> to vector<2x8x1xf32>
    %43 = tpu.reciprocal %42 {approx = true} : vector<2x8x1xf32> -> vector<2x8x1xf32>
    %44 = vector.broadcast %43 : vector<2x8x1xf32> to vector<2x8x8xf32>
    %45 = arith.mulf %40, %44 : vector<2x8x8xf32>
    %46 = arith.truncf %45 : vector<2x8x8xf32> to vector<2x8x8xbf16>
    "tpu.trace_start"() <{level = 10 : i32, message = "bqk,bkd->bqd"}> : () -> ()
    %cst_23 = arith.constant dense<0.000000e+00> : vector<2x8x16xf32>
    %47 = tpu.matmul %46, %32, %cst_23 {dimension_numbers = #tpu.dot_dimension_numbers<[2], [1], [1], [2], [0, 0, 0, 1, 1, 2], [0], [0]>} : vector<2x8x8xbf16>, vector<2x8x16xbf16>, vector<2x8x16xf32> -> vector<2x8x16xf32>
    "tpu.trace_stop"() : () -> ()
    %48 = vector.shape_cast %47 : vector<2x8x16xf32> to vector<16x16xf32>
    %49 = arith.truncf %48 : vector<16x16xf32> to vector<16x16xbf16>
    %c0_24 = arith.constant 0 : index
    %c0_25 = arith.constant 0 : index
    %c0_26 = arith.constant 0 : index
    %50 = vector.load %arg10[%c0_24, %c0_25, %c0_26] : memref<2x16x32xbf16, #tpu.memory_space<vmem>>, vector<1x16x32xbf16>
    %51 = vector.shape_cast %50 : vector<1x16x32xbf16> to vector<16x32xbf16>
    %cst_27 = arith.constant dense<0.000000e+00> : vector<16x32xf32>
    %52 = tpu.matmul %49, %51, %cst_27 {dimension_numbers = #tpu.dot_dimension_numbers<[1], [0], [0], [1], [0, 0, 1, 1], [], []>} : vector<16x16xbf16>, vector<16x32xbf16>, vector<16x32xf32> -> vector<16x32xf32>
    %53 = vector.extract_strided_slice %23 {offsets = [0, 0, 16], sizes = [2, 8, 16], strides = [1, 1, 1]} : vector<2x8x32xf32> to vector<2x8x16xf32>
    %54 = arith.truncf %53 : vector<2x8x16xf32> to vector<2x8x16xbf16>
    %55 = vector.extract_strided_slice %24 {offsets = [0, 0, 16], sizes = [2, 8, 16], strides = [1, 1, 1]} : vector<2x8x32xf32> to vector<2x8x16xf32>
    %56 = arith.truncf %55 : vector<2x8x16xf32> to vector<2x8x16xbf16>
    %57 = vector.extract_strided_slice %25 {offsets = [0, 0, 16], sizes = [2, 8, 16], strides = [1, 1, 1]} : vector<2x8x32xf32> to vector<2x8x16xf32>
    %58 = arith.truncf %57 : vector<2x8x16xf32> to vector<2x8x16xbf16>
    "tpu.trace_start"() <{level = 10 : i32, message = "bqd,bkd->bqk"}> : () -> ()
    %cst_28 = arith.constant dense<0.000000e+00> : vector<2x8x8xf32>
    %59 = tpu.matmul %54, %56, %cst_28 {dimension_numbers = #tpu.dot_dimension_numbers<[2], [2], [1], [1], [0, 0, 0, 1, 1, 1], [0], [0]>} : vector<2x8x16xbf16>, vector<2x8x16xbf16>, vector<2x8x8xf32> -> vector<2x8x8xf32>
    "tpu.trace_stop"() : () -> ()
    %60 = vector.broadcast %26 : vector<2x1x8xf32> to vector<2x8x8xf32>
    %61 = arith.addf %59, %60 : vector<2x8x8xf32>
    %cst_29 = arith.constant dense<0xFF800000> : vector<2x8xf32>
    %62 = vector.multi_reduction <maximumf>, %61, %cst_29 [2] : vector<2x8x8xf32> to vector<2x8xf32>
    %63 = vector.shape_cast %62 : vector<2x8xf32> to vector<2x8x1xf32>
    %64 = vector.broadcast %63 : vector<2x8x1xf32> to vector<2x8x8xf32>
    %65 = arith.subf %61, %64 : vector<2x8x8xf32>
    %66 = math.exp %65 : vector<2x8x8xf32>
    %cst_30 = arith.constant dense<0.000000e+00> : vector<2x8xf32>
    %67 = vector.multi_reduction <add>, %66, %cst_30 [2] : vector<2x8x8xf32> to vector<2x8xf32>
    %68 = vector.shape_cast %67 : vector<2x8xf32> to vector<2x8x1xf32>
    %69 = tpu.reciprocal %68 {approx = true} : vector<2x8x1xf32> -> vector<2x8x1xf32>
    %70 = vector.broadcast %69 : vector<2x8x1xf32> to vector<2x8x8xf32>
    %71 = arith.mulf %66, %70 : vector<2x8x8xf32>
    %72 = arith.truncf %71 : vector<2x8x8xf32> to vector<2x8x8xbf16>
    "tpu.trace_start"() <{level = 10 : i32, message = "bqk,bkd->bqd"}> : () -> ()
    %cst_31 = arith.constant dense<0.000000e+00> : vector<2x8x16xf32>
    %73 = tpu.matmul %72, %58, %cst_31 {dimension_numbers = #tpu.dot_dimension_numbers<[2], [1], [1], [2], [0, 0, 0, 1, 1, 2], [0], [0]>} : vector<2x8x8xbf16>, vector<2x8x16xbf16>, vector<2x8x16xf32> -> vector<2x8x16xf32>
    "tpu.trace_stop"() : () -> ()
    %74 = vector.shape_cast %73 : vector<2x8x16xf32> to vector<16x16xf32>
    %75 = arith.truncf %74 : vector<16x16xf32> to vector<16x16xbf16>
    %c1 = arith.constant 1 : index
    %c0_32 = arith.constant 0 : index
    %c0_33 = arith.constant 0 : index
    %76 = vector.load %arg10[%c1, %c0_32, %c0_33] : memref<2x16x32xbf16, #tpu.memory_space<vmem>>, vector<1x16x32xbf16>
    %77 = vector.shape_cast %76 : vector<1x16x32xbf16> to vector<16x32xbf16>
    %cst_34 = arith.constant dense<0.000000e+00> : vector<16x32xf32>
    %78 = tpu.matmul %75, %77, %cst_34 {dimension_numbers = #tpu.dot_dimension_numbers<[1], [0], [0], [1], [0, 0, 1, 1], [], []>} : vector<16x16xbf16>, vector<16x32xbf16>, vector<16x32xf32> -> vector<16x32xf32>
    %79 = arith.addf %52, %78 : vector<16x32xf32>
    %c0_35 = arith.constant 0 : index
    %c0_36 = arith.constant 0 : index
    %80 = vector.load %arg11[%c0_35, %c0_36] : memref<1x32xf32, #tpu.memory_space<vmem>>, vector<1x32xf32>
    %81 = vector.shape_cast %80 : vector<1x32xf32> to vector<32xf32>
    %82 = vector.shape_cast %81 : vector<32xf32> to vector<1x32xf32>
    %83 = vector.broadcast %82 : vector<1x32xf32> to vector<16x32xf32>
    %84 = arith.addf %79, %83 : vector<16x32xf32>
    %85 = arith.extf %1 : vector<16x32xbf16> to vector<16x32xf32>
    %86 = arith.addf %84, %85 : vector<16x32xf32>
    %cst_37 = arith.constant dense<0.000000e+00> : vector<16xf32>
    %87 = vector.multi_reduction <add>, %86, %cst_37 [1] : vector<16x32xf32> to vector<16xf32>
    %88 = vector.shape_cast %87 : vector<16xf32> to vector<16x1xf32>
    %cst_38 = arith.constant 3.200000e+01 : f32
    %89 = vector.broadcast %cst_38 : f32 to vector<16x1xf32>
    %90 = arith.divf %88, %89 : vector<16x1xf32>
    %91 = vector.broadcast %90 : vector<16x1xf32> to vector<16x32xf32>
    %92 = arith.subf %86, %91 : vector<16x32xf32>
    %93 = arith.mulf %92, %92 : vector<16x32xf32>
    %cst_39 = arith.constant dense<0.000000e+00> : vector<16xf32>
    %94 = vector.multi_reduction <add>, %93, %cst_39 [1] : vector<16x32xf32> to vector<16xf32>
    %95 = vector.shape_cast %94 : vector<16xf32> to vector<16x1xf32>
    %cst_40 = arith.constant 3.200000e+01 : f32
    %96 = vector.broadcast %cst_40 : f32 to vector<16x1xf32>
    %97 = arith.divf %95, %96 : vector<16x1xf32>
    %cst_41 = arith.constant 9.99999996E-13 : f32
    %98 = vector.broadcast %cst_41 : f32 to vector<16x1xf32>
    %99 = arith.addf %97, %98 : vector<16x1xf32>
    %100 = math.rsqrt %99 : vector<16x1xf32>
    %101 = vector.broadcast %100 : vector<16x1xf32> to vector<16x32xf32>
    %102 = arith.mulf %92, %101 : vector<16x32xf32>
    %c0_42 = arith.constant 0 : index
    %c0_43 = arith.constant 0 : index
    %103 = vector.load %arg12[%c0_42, %c0_43] : memref<1x32xf32, #tpu.memory_space<vmem>>, vector<1x32xf32>
    %104 = vector.shape_cast %103 : vector<1x32xf32> to vector<32xf32>
    %105 = vector.shape_cast %104 : vector<32xf32> to vector<1x32xf32>
    %106 = vector.broadcast %105 : vector<1x32xf32> to vector<16x32xf32>
    %107 = arith.mulf %102, %106 : vector<16x32xf32>
    %c0_44 = arith.constant 0 : index
    %c0_45 = arith.constant 0 : index
    %108 = vector.load %arg13[%c0_44, %c0_45] : memref<1x32xf32, #tpu.memory_space<vmem>>, vector<1x32xf32>
    %109 = vector.shape_cast %108 : vector<1x32xf32> to vector<32xf32>
    %110 = vector.shape_cast %109 : vector<32xf32> to vector<1x32xf32>
    %111 = vector.broadcast %110 : vector<1x32xf32> to vector<16x32xf32>
    %112 = arith.addf %107, %111 : vector<16x32xf32>
    %c0_46 = arith.constant 0 : index
    %c0_47 = arith.constant 0 : index
    %113 = vector.load %arg14[%c0_46, %c0_47] : memref<16x32xf32, #tpu.memory_space<vmem>>, vector<16x32xf32>
    tpu.vector_store %arg14[%c0_46, %c0_47], %112 {strides = array<i32>} : memref<16x32xf32, #tpu.memory_space<vmem>>, vector<16x32xf32>,
    return
  }
  func.func @transform_0(%arg0: i32) -> (i32, i32) {
    %c0_i32 = arith.constant 0 : i32
    %c0_i32_0 = arith.constant 0 : i32
    return %arg0, %c0_i32 : i32, i32
  }
  func.func @transform_1(%arg0: i32) -> (i32, i32) {
    %c0_i32 = arith.constant 0 : i32
    %c0_i32_0 = arith.constant 0 : i32
    return %arg0, %c0_i32 : i32, i32
  }
  func.func @transform_2(%arg0: i32) -> (i32, i32, i32) {
    %c0_i32 = arith.constant 0 : i32
    %c0_i32_0 = arith.constant 0 : i32
    %c0_i32_1 = arith.constant 0 : i32
    return %arg0, %c0_i32, %c0_i32_0 : i32, i32, i32
  }
  func.func @transform_3(%arg0: i32) -> (i32, i32) {
    %c0_i32 = arith.constant 0 : i32
    %c0_i32_0 = arith.constant 0 : i32
    %c0_i32_1 = arith.constant 0 : i32
    return %c0_i32, %c0_i32_0 : i32, i32
  }
  func.func @transform_4(%arg0: i32) -> (i32, i32) {
    %c0_i32 = arith.constant 0 : i32
    %c0_i32_0 = arith.constant 0 : i32
    %c0_i32_1 = arith.constant 0 : i32
    return %c0_i32, %c0_i32_0 : i32, i32
  }
  func.func @transform_5(%arg0: i32) -> (i32, i32) {
    %c0_i32 = arith.constant 0 : i32
    %c0_i32_0 = arith.constant 0 : i32
    %c0_i32_1 = arith.constant 0 : i32
    return %c0_i32, %c0_i32_0 : i32, i32
  }
  func.func @transform_6(%arg0: i32) -> (i32, i32) {
    %c0_i32 = arith.constant 0 : i32
    %c0_i32_0 = arith.constant 0 : i32
    %c0_i32_1 = arith.constant 0 : i32
    return %c0_i32, %c0_i32_0 : i32, i32
  }
  func.func @transform_7(%arg0: i32) -> (i32, i32) {
    %c0_i32 = arith.constant 0 : i32
    %c0_i32_0 = arith.constant 0 : i32
    %c0_i32_1 = arith.constant 0 : i32
    return %c0_i32, %c0_i32_0 : i32, i32
  }
  func.func @transform_8(%arg0: i32) -> (i32, i32) {
    %c0_i32 = arith.constant 0 : i32
    %c0_i32_0 = arith.constant 0 : i32
    %c0_i32_1 = arith.constant 0 : i32
    return %c0_i32, %c0_i32_0 : i32, i32
  }
  func.func @transform_9(%arg0: i32) -> (i32, i32, i32) {
    %c0_i32 = arith.constant 0 : i32
    %c0_i32_0 = arith.constant 0 : i32
    %c0_i32_1 = arith.constant 0 : i32
    %c0_i32_2 = arith.constant 0 : i32
    return %c0_i32, %c0_i32_0, %c0_i32_1 : i32, i32, i32
  }
  func.func @transform_10(%arg0: i32) -> (i32, i32) {
    %c0_i32 = arith.constant 0 : i32
    %c0_i32_0 = arith.constant 0 : i32
    %c0_i32_1 = arith.constant 0 : i32
    return %c0_i32, %c0_i32_0 : i32, i32
  }
  func.func @transform_11(%arg0: i32) -> (i32, i32) {
    %c0_i32 = arith.constant 0 : i32
    %c0_i32_0 = arith.constant 0 : i32
    %c0_i32_1 = arith.constant 0 : i32
    return %c0_i32, %c0_i32_0 : i32, i32
  }
  func.func @transform_12(%arg0: i32) -> (i32, i32) {
    %c0_i32 = arith.constant 0 : i32
    %c0_i32_0 = arith.constant 0 : i32
    %c0_i32_1 = arith.constant 0 : i32
    return %c0_i32, %c0_i32_0 : i32, i32
  }
  func.func @transform_13(%arg0: i32) -> (i32, i32) {
    %c0_i32 = arith.constant 0 : i32
    %c0_i32_0 = arith.constant 0 : i32
    return %arg0, %c0_i32 : i32, i32
  }
}

module attributes {stable_mosaic.version = 11 : i64} {
  func.func @mhca_kernel(%arg0: i32, %arg1: memref<16x32xbf16, #tpu.memory_space<vmem>>, %arg2: memref<16x32xbf16, #tpu.memory_space<vmem>>, %arg3: memref<2x1x8xf32, #tpu.memory_space<vmem>>, %arg4: memref<32x32xbf16, #tpu.memory_space<vmem>>, %arg5: memref<1x32xf32, #tpu.memory_space<vmem>>, %arg6: memref<32x32xbf16, #tpu.memory_space<vmem>>, %arg7: memref<1x32xf32, #tpu.memory_space<vmem>>, %arg8: memref<32x32xbf16, #tpu.memory_space<vmem>>, %arg9: memref<1x32xf32, #tpu.memory_space<vmem>>, %arg10: memref<2x16x32xbf16, #tpu.memory_space<vmem>>, %arg11: memref<1x32xf32, #tpu.memory_space<vmem>>, %arg12: memref<1x32xf32, #tpu.memory_space<vmem>>, %arg13: memref<1x32xf32, #tpu.memory_space<vmem>>, %arg14: memref<16x32xf32, #tpu.memory_space<vmem>>) attributes {dimension_semantics = [#tpu.dimension_semantics<parallel>], iteration_bounds = array<i64: 1>, scalar_prefetch = 0 : i64, scratch_operands = 0 : i64, tpu.core_type = #tpu.core_type<tc>, window_params = [{transform_indices = @transform_0, window_bounds = array<i64: 16, 32>}, {transform_indices = @transform_1, window_bounds = array<i64: 16, 32>}, {transform_indices = @transform_2, window_bounds = array<i64: 2, 1, 8>}, {pipeline_mode = #tpu.pipeline_mode<synchronous>, transform_indices = @transform_3, window_bounds = array<i64: 32, 32>}, {pipeline_mode = #tpu.pipeline_mode<synchronous>, transform_indices = @transform_4, window_bounds = array<i64: 1, 32>}, {pipeline_mode = #tpu.pipeline_mode<synchronous>, transform_indices = @transform_5, window_bounds = array<i64: 32, 32>}, {pipeline_mode = #tpu.pipeline_mode<synchronous>, transform_indices = @transform_6, window_bounds = array<i64: 1, 32>}, {pipeline_mode = #tpu.pipeline_mode<synchronous>, transform_indices = @transform_7, window_bounds = array<i64: 32, 32>}, {pipeline_mode = #tpu.pipeline_mode<synchronous>, transform_indices = @transform_8, window_bounds = array<i64: 1, 32>}, {pipeline_mode = #tpu.pipeline_mode<synchronous>, transform_indices = @transform_9, window_bounds = array<i64: 2, 16, 32>}, {pipeline_mode = #tpu.pipeline_mode<synchronous>, transform_indices = @transform_10, window_bounds = array<i64: 1, 32>}, {pipeline_mode = #tpu.pipeline_mode<synchronous>, transform_indices = @transform_11, window_bounds = array<i64: 1, 32>}, {pipeline_mode = #tpu.pipeline_mode<synchronous>, transform_indices = @transform_12, window_bounds = array<i64: 1, 32>}, {transform_indices = @transform_13, window_bounds = array<i64: 16, 32>}]} {
    %c0 = arith.constant 0 : index
    %c0_0 = arith.constant 0 : index
    %0 = vector.load %arg1[%c0, %c0_0] : memref<16x32xbf16, #tpu.memory_space<vmem>>, vector<16x32xbf16>
    %c0_1 = arith.constant 0 : index
    %c0_2 = arith.constant 0 : index
    %1 = vector.load %arg2[%c0_1, %c0_2] : memref<16x32xbf16, #tpu.memory_space<vmem>>, vector<16x32xbf16>
    %c0_3 = arith.constant 0 : index
    %c0_4 = arith.constant 0 : index
    %2 = vector.load %arg4[%c0_3, %c0_4] : memref<32x32xbf16, #tpu.memory_space<vmem>>, vector<32x32xbf16>
    %cst = arith.constant dense<0.000000e+00> : vector<16x32xf32>
    %3 = tpu.matmul %0, %2, %cst {dimension_numbers = #tpu.dot_dimension_numbers<[1], [0], [0], [1], [0, 0, 1, 1], [], []>} : vector<16x32xbf16>, vector<32x32xbf16>, vector<16x32xf32> -> vector<16x32xf32>
    %c0_5 = arith.constant 0 : index
    %c0_6 = arith.constant 0 : index
    %4 = vector.load %arg5[%c0_5, %c0_6] : memref<1x32xf32, #tpu.memory_space<vmem>>, vector<1x32xf32>
    %5 = vector.shape_cast %4 : vector<1x32xf32> to vector<32xf32>
    %6 = vector.shape_cast %5 : vector<32xf32> to vector<1x32xf32>
    %7 = vector.broadcast %6 : vector<1x32xf32> to vector<16x32xf32>
    %8 = arith.addf %3, %7 : vector<16x32xf32>
    %c0_7 = arith.constant 0 : index
    %c0_8 = arith.constant 0 : index
    %9 = vector.load %arg6[%c0_7, %c0_8] : memref<32x32xbf16, #tpu.memory_space<vmem>>, vector<32x32xbf16>
    %cst_9 = arith.constant dense<0.000000e+00> : vector<16x32xf32>
    %10 = tpu.matmul %0, %9, %cst_9 {dimension_numbers = #tpu.dot_dimension_numbers<[1], [0], [0], [1], [0, 0, 1, 1], [], []>} : vector<16x32xbf16>, vector<32x32xbf16>, vector<16x32xf32> -> vector<16x32xf32>
    %c0_10 = arith.constant 0 : index
    %c0_11 = arith.constant 0 : index
    %11 = vector.load %arg7[%c0_10, %c0_11] : memref<1x32xf32, #tpu.memory_space<vmem>>, vector<1x32xf32>
    %12 = vector.shape_cast %11 : vector<1x32xf32> to vector<32xf32>
    %13 = vector.shape_cast %12 : vector<32xf32> to vector<1x32xf32>
    %14 = vector.broadcast %13 : vector<1x32xf32> to vector<16x32xf32>
    %15 = arith.addf %10, %14 : vector<16x32xf32>
    %c0_12 = arith.constant 0 : index
    %c0_13 = arith.constant 0 : index
    %16 = vector.load %arg8[%c0_12, %c0_13] : memref<32x32xbf16, #tpu.memory_space<vmem>>, vector<32x32xbf16>
    %cst_14 = arith.constant dense<0.000000e+00> : vector<16x32xf32>
    %17 = tpu.matmul %1, %16, %cst_14 {dimension_numbers = #tpu.dot_dimension_numbers<[1], [0], [0], [1], [0, 0, 1, 1], [], []>} : vector<16x32xbf16>, vector<32x32xbf16>, vector<16x32xf32> -> vector<16x32xf32>
    %c0_15 = arith.constant 0 : index
    %c0_16 = arith.constant 0 : index
    %18 = vector.load %arg9[%c0_15, %c0_16] : memref<1x32xf32, #tpu.memory_space<vmem>>, vector<1x32xf32>
    %19 = vector.shape_cast %18 : vector<1x32xf32> to vector<32xf32>
    %20 = vector.shape_cast %19 : vector<32xf32> to vector<1x32xf32>
    %21 = vector.broadcast %20 : vector<1x32xf32> to vector<16x32xf32>
    %22 = arith.addf %17, %21 : vector<16x32xf32>
    %23 = vector.shape_cast %8 : vector<16x32xf32> to vector<2x8x32xf32>
    %24 = vector.shape_cast %15 : vector<16x32xf32> to vector<2x8x32xf32>
    %25 = vector.shape_cast %22 : vector<16x32xf32> to vector<2x8x32xf32>
    %c0_17 = arith.constant 0 : index
    %c0_18 = arith.constant 0 : index
    %c0_19 = arith.constant 0 : index
    %26 = vector.load %arg3[%c0_17, %c0_18, %c0_19] : memref<2x1x8xf32, #tpu.memory_space<vmem>>, vector<2x1x8xf32>
    %27 = vector.extract_strided_slice %23 {offsets = [0, 0, 0], sizes = [2, 8, 16], strides = [1, 1, 1]} : vector<2x8x32xf32> to vector<2x8x16xf32>
    %28 = arith.truncf %27 : vector<2x8x16xf32> to vector<2x8x16xbf16>
    %29 = vector.extract_strided_slice %24 {offsets = [0, 0, 0], sizes = [2, 8, 16], strides = [1, 1, 1]} : vector<2x8x32xf32> to vector<2x8x16xf32>
    %30 = arith.truncf %29 : vector<2x8x16xf32> to vector<2x8x16xbf16>
    %31 = vector.extract_strided_slice %25 {offsets = [0, 0, 0], sizes = [2, 8, 16], strides = [1, 1, 1]} : vector<2x8x32xf32> to vector<2x8x16xf32>
    %32 = arith.truncf %31 : vector<2x8x16xf32> to vector<2x8x16xbf16>
    "tpu.trace_start"() <{level = 10 : i32, message = "bqd,bkd->bqk"}> : () -> ()
    %cst_20 = arith.constant dense<0.000000e+00> : vector<2x8x8xf32>
    %33 = tpu.matmul %28, %30, %cst_20 {dimension_numbers = #tpu.dot_dimension_numbers<[2], [2], [1], [1], [0, 0, 0, 1, 1, 1], [0], [0]>} : vector<2x8x16xbf16>, vector<2x8x16xbf16>, vector<2x8x8xf32> -> vector<2x8x8xf32>
    "tpu.trace_stop"() : () -> ()
    %34 = vector.broadcast %26 : vector<2x1x8xf32> to vector<2x8x8xf32>
    %35 = arith.addf %33, %34 : vector<2x8x8xf32>
    %cst_21 = arith.constant dense<0xFF800000> : vector<2x8xf32>
    %36 = vector.multi_reduction <maximumf>, %35, %cst_21 [2] : vector<2x8x8xf32> to vector<2x8xf32>
    %37 = vector.shape_cast %36 : vector<2x8xf32> to vector<2x8x1xf32>
    %38 = vector.broadcast %37 : vector<2x8x1xf32> to vector<2x8x8xf32>
    %39 = arith.subf %35, %38 : vector<2x8x8xf32>
    %40 = math.exp %39 : vector<2x8x8xf32>
    %cst_22 = arith.constant dense<0.000000e+00> : vector<2x8xf32>
    %41 = vector.multi_reduction <add>, %40, %cst_22 [2] : vector<2x8x8xf32> to vector<2x8xf32>
    %42 = vector.shape_cast %41 : vector<2x8xf32> to vector<2x8x1xf32>
    %43 = tpu.reciprocal %42 {approx = true} : vector<2x8x1xf32> -> vector<2x8x1xf32>
    %44 = vector.broadcast %43 : vector<2x8x1xf32> to vector<2x8x8xf32>
    %45 = arith.mulf %40, %44 : vector<2x8x8xf32>
    %46 = arith.truncf %45 : vector<2x8x8xf32> to vector<2x8x8xbf16>
    "tpu.trace_start"() <{level = 10 : i32, message = "bqk,bkd->bqd"}> : () -> ()
    %cst_23 = arith.constant dense<0.000000e+00> : vector<2x8x16xf32>
    %47 = tpu.matmul %46, %32, %cst_23 {dimension_numbers = #tpu.dot_dimension_numbers<[2], [1], [1], [2], [0, 0, 0, 1, 1, 2], [0], [0]>} : vector<2x8x8xbf16>, vector<2x8x16xbf16>, vector<2x8x16xf32> -> vector<2x8x16xf32>
    "tpu.trace_stop"() : () -> ()
    %48 = vector.shape_cast %47 : vector<2x8x16xf32> to vector<16x16xf32>
    %49 = arith.truncf %48 : vector<16x16xf32> to vector<16x16xbf16>
    %c0_24 = arith.constant 0 : index
    %c0_25 = arith.constant 0 : index
    %c0_26 = arith.constant 0 : index
    %50 = vector.load %arg10[%c0_24, %c0_25, %c0_26] : memref<2x16x32xbf16, #tpu.memory_space<vmem>>, vector<1x16x32xbf16>
    %51 = vector.shape_cast %50 : vector<1x16x32xbf16> to vector<16x32xbf16>
    %cst_27 = arith.constant dense<0.000000e+00> : vector<16x32xf32>
    %52 = tpu.matmul %49, %51, %cst_27 {dimension_numbers = #tpu.dot_dimension_numbers<[1], [0], [0], [1], [0, 0, 1, 1], [], []>} : vector<16x16xbf16>, vector<16x32xbf16>, vector<16x32xf32> -> vector<16x32xf32>
    %53 = vector.extract_strided_slice %23 {offsets = [0, 0, 16], sizes = [2, 8, 16], strides = [1, 1, 1]} : vector<2x8x32xf32> to vector<2x8x16xf32>
    %54 = arith.truncf %53 : vector<2x8x16xf32> to vector<2x8x16xbf16>
    %55 = vector.extract_strided_slice %24 {offsets = [0, 0, 16], sizes = [2, 8, 16], strides = [1, 1, 1]} : vector<2x8x32xf32> to vector<2x8x16xf32>
    %56 = arith.truncf %55 : vector<2x8x16xf32> to vector<2x8x16xbf16>
    %57 = vector.extract_strided_slice %25 {offsets = [0, 0, 16], sizes = [2, 8, 16], strides = [1, 1, 1]} : vector<2x8x32xf32> to vector<2x8x16xf32>
    %58 = arith.truncf %57 : vector<2x8x16xf32> to vector<2x8x16xbf16>
    "tpu.trace_start"() <{level = 10 : i32, message = "bqd,bkd->bqk"}> : () -> ()
    %cst_28 = arith.constant dense<0.000000e+00> : vector<2x8x8xf32>
    %59 = tpu.matmul %54, %56, %cst_28 {dimension_numbers = #tpu.dot_dimension_numbers<[2], [2], [1], [1], [0, 0, 0, 1, 1, 1], [0], [0]>} : vector<2x8x16xbf16>, vector<2x8x16xbf16>, vector<2x8x8xf32> -> vector<2x8x8xf32>
    "tpu.trace_stop"() : () -> ()
    %60 = vector.broadcast %26 : vector<2x1x8xf32> to vector<2x8x8xf32>
    %61 = arith.addf %59, %60 : vector<2x8x8xf32>
    %cst_29 = arith.constant dense<0xFF800000> : vector<2x8xf32>
    %62 = vector.multi_reduction <maximumf>, %61, %cst_29 [2] : vector<2x8x8xf32> to vector<2x8xf32>
    %63 = vector.shape_cast %62 : vector<2x8xf32> to vector<2x8x1xf32>
    %64 = vector.broadcast %63 : vector<2x8x1xf32> to vector<2x8x8xf32>
    %65 = arith.subf %61, %64 : vector<2x8x8xf32>
    %66 = math.exp %65 : vector<2x8x8xf32>
    %cst_30 = arith.constant dense<0.000000e+00> : vector<2x8xf32>
    %67 = vector.multi_reduction <add>, %66, %cst_30 [2] : vector<2x8x8xf32> to vector<2x8xf32>
    %68 = vector.shape_cast %67 : vector<2x8xf32> to vector<2x8x1xf32>
    %69 = tpu.reciprocal %68 {approx = true} : vector<2x8x1xf32> -> vector<2x8x1xf32>
    %70 = vector.broadcast %69 : vector<2x8x1xf32> to vector<2x8x8xf32>
    %71 = arith.mulf %66, %70 : vector<2x8x8xf32>
    %72 = arith.truncf %71 : vector<2x8x8xf32> to vector<2x8x8xbf16>
    "tpu.trace_start"() <{level = 10 : i32, message = "bqk,bkd->bqd"}> : () -> ()
    %cst_31 = arith.constant dense<0.000000e+00> : vector<2x8x16xf32>
    %73 = tpu.matmul %72, %58, %cst_31 {dimension_numbers = #tpu.dot_dimension_numbers<[2], [1], [1], [2], [0, 0, 0, 1, 1, 2], [0], [0]>} : vector<2x8x8xbf16>, vector<2x8x16xbf16>, vector<2x8x16xf32> -> vector<2x8x16xf32>
    "tpu.trace_stop"() : () -> ()
    %74 = vector.shape_cast %73 : vector<2x8x16xf32> to vector<16x16xf32>
    %75 = arith.truncf %74 : vector<16x16xf32> to vector<16x16xbf16>
    %c1 = arith.constant 1 : index
    %c0_32 = arith.constant 0 : index
    %c0_33 = arith.constant 0 : index
    %76 = vector.load %arg10[%c1, %c0_32, %c0_33] : memref<2x16x32xbf16, #tpu.memory_space<vmem>>, vector<1x16x32xbf16>
    %77 = vector.shape_cast %76 : vector<1x16x32xbf16> to vector<16x32xbf16>
    %cst_34 = arith.constant dense<0.000000e+00> : vector<16x32xf32>
    %78 = tpu.matmul %75, %77, %cst_34 {dimension_numbers = #tpu.dot_dimension_numbers<[1], [0], [0], [1], [0, 0, 1, 1], [], []>} : vector<16x16xbf16>, vector<16x32xbf16>, vector<16x32xf32> -> vector<16x32xf32>
    %79 = arith.addf %52, %78 : vector<16x32xf32>
    %c0_35 = arith.constant 0 : index
    %c0_36 = arith.constant 0 : index
    %80 = vector.load %arg11[%c0_35, %c0_36] : memref<1x32xf32, #tpu.memory_space<vmem>>, vector<1x32xf32>
    %81 = vector.shape_cast %80 : vector<1x32xf32> to vector<32xf32>
    %82 = vector.shape_cast %81 : vector<32xf32> to vector<1x32xf32>
    %83 = vector.broadcast %82 : vector<1x32xf32> to vector<16x32xf32>
    %84 = arith.addf %79, %83 : vector<16x32xf32>
    %85 = arith.extf %1 : vector<16x32xbf16> to vector<16x32xf32>
    %86 = arith.addf %84, %85 : vector<16x32xf32>
    %cst_37 = arith.constant dense<0.000000e+00> : vector<16xf32>
    %87 = vector.multi_reduction <add>, %86, %cst_37 [1] : vector<16x32xf32> to vector<16xf32>
    %88 = vector.shape_cast %87 : vector<16xf32> to vector<16x1xf32>
    %cst_38 = arith.constant 3.200000e+01 : f32
    %89 = vector.broadcast %cst_38 : f32 to vector<16x1xf32>
    %90 = arith.divf %88, %89 : vector<16x1xf32>
    %91 = vector.broadcast %90 : vector<16x1xf32> to vector<16x32xf32>
    %92 = arith.subf %86, %91 : vector<16x32xf32>
    %93 = arith.mulf %92, %92 : vector<16x32xf32>
    %cst_39 = arith.constant dense<0.000000e+00> : vector<16xf32>
    %94 = vector.multi_reduction <add>, %93, %cst_39 [1] : vector<16x32xf32> to vector<16xf32>
    %95 = vector.shape_cast %94 : vector<16xf32> to vector<16x1xf32>
    %cst_40 = arith.constant 3.200000e+01 : f32
    %96 = vector.broadcast %cst_40 : f32 to vector<16x1xf32>
    %97 = arith.divf %95, %96 : vector<16x1xf32>
    %cst_41 = arith.constant 9.99999996E-13 : f32
    %98 = vector.broadcast %cst_41 : f32 to vector<16x1xf32>
    %99 = arith.addf %97, %98 : vector<16x1xf32>
    %100 = math.rsqrt %99 : vector<16x1xf32>
    %101 = vector.broadcast %100 : vector<16x1xf32> to vector<16x32xf32>
    %102 = arith.mulf %92, %101 : vector<16x32xf32>
    %c0_42 = arith.constant 0 : index
    %c0_43 = arith.constant 0 : index
    %103 = vector.load %arg12[%c0_42, %c0_43] : memref<1x32xf32, #tpu.memory_space<vmem>>, vector<1x32xf32>
    %104 = vector.shape_cast %103 : vector<1x32xf32> to vector<32xf32>
    %105 = vector.shape_cast %104 : vector<32xf32> to vector<1x32xf32>
    %106 = vector.broadcast %105 : vector<1x32xf32> to vector<16x32xf32>
    %107 = arith.mulf %102, %106 : vector<16x32xf32>
    %c0_44 = arith.constant 0 : index
    %c0_45 = arith.constant 0 : index
    %108 = vector.load %arg13[%c0_44, %c0_45] : memref<1x32xf32, #tpu.memory_space<vmem>>, vector<1x32xf32>
    %109 = vector.shape_cast %108 : vector<1x32xf32> to vector<32xf32>
    %110 = vector.shape_cast %109 : vector<32xf32> to vector<1x32xf32>
    %111 = vector.broadcast %110 : vector<1x32xf32> to vector<16x32xf32>
    %112 = arith.addf %107, %111 : vector<16x32xf32>
    %c0_46 = arith.constant 0 : index
    %c0_47 = arith.constant 0 : index
    %113 = vector.load %arg14[%c0_46, %c0_47] : memref<16x32xf32, #tpu.memory_space<vmem>>, vector<16x32xf32>
    tpu.vector_store %arg14[%c0_46, %c0_47], %112 {strides = array<i32>} : memref<16x32xf32, #tpu.memory_space<vmem>>, vector<16x32xf32>,
    return
  }
  func.func @transform_0(%arg0: i32) -> (i32, i32) {
    %c0_i32 = arith.constant 0 : i32
    %c0_i32_0 = arith.constant 0 : i32
    return %arg0, %c0_i32 : i32, i32
  }
  func.func @transform_1(%arg0: i32) -> (i32, i32) {
    %c0_i32 = arith.constant 0 : i32
    %c0_i32_0 = arith.constant 0 : i32
    return %arg0, %c0_i32 : i32, i32
  }
  func.func @transform_2(%arg0: i32) -> (i32, i32, i32) {
    %c0_i32 = arith.constant 0 : i32
    %c0_i32_0 = arith.constant 0 : i32
    %c0_i32_1 = arith.constant 0 : i32
    return %arg0, %c0_i32, %c0_i32_0 : i32, i32, i32
  }
  func.func @transform_3(%arg0: i32) -> (i32, i32) {
    %c0_i32 = arith.constant 0 : i32
    %c0_i32_0 = arith.constant 0 : i32
    %c0_i32_1 = arith.constant 0 : i32
    return %c0_i32, %c0_i32_0 : i32, i32
  }
  func.func @transform_4(%arg0: i32) -> (i32, i32) {
    %c0_i32 = arith.constant 0 : i32
    %c0_i32_0 = arith.constant 0 : i32
    %c0_i32_1 = arith.constant 0 : i32
    return %c0_i32, %c0_i32_0 : i32, i32
  }
  func.func @transform_5(%arg0: i32) -> (i32, i32) {
    %c0_i32 = arith.constant 0 : i32
    %c0_i32_0 = arith.constant 0 : i32
    %c0_i32_1 = arith.constant 0 : i32
    return %c0_i32, %c0_i32_0 : i32, i32
  }
  func.func @transform_6(%arg0: i32) -> (i32, i32) {
    %c0_i32 = arith.constant 0 : i32
    %c0_i32_0 = arith.constant 0 : i32
    %c0_i32_1 = arith.constant 0 : i32
    return %c0_i32, %c0_i32_0 : i32, i32
  }
  func.func @transform_7(%arg0: i32) -> (i32, i32) {
    %c0_i32 = arith.constant 0 : i32
    %c0_i32_0 = arith.constant 0 : i32
    %c0_i32_1 = arith.constant 0 : i32
    return %c0_i32, %c0_i32_0 : i32, i32
  }
  func.func @transform_8(%arg0: i32) -> (i32, i32) {
    %c0_i32 = arith.constant 0 : i32
    %c0_i32_0 = arith.constant 0 : i32
    %c0_i32_1 = arith.constant 0 : i32
    return %c0_i32, %c0_i32_0 : i32, i32
  }
  func.func @transform_9(%arg0: i32) -> (i32, i32, i32) {
    %c0_i32 = arith.constant 0 : i32
    %c0_i32_0 = arith.constant 0 : i32
    %c0_i32_1 = arith.constant 0 : i32
    %c0_i32_2 = arith.constant 0 : i32
    return %c0_i32, %c0_i32_0, %c0_i32_1 : i32, i32, i32
  }
  func.func @transform_10(%arg0: i32) -> (i32, i32) {
    %c0_i32 = arith.constant 0 : i32
    %c0_i32_0 = arith.constant 0 : i32
    %c0_i32_1 = arith.constant 0 : i32
    return %c0_i32, %c0_i32_0 : i32, i32
  }
  func.func @transform_11(%arg0: i32) -> (i32, i32) {
    %c0_i32 = arith.constant 0 : i32
    %c0_i32_0 = arith.constant 0 : i32
    %c0_i32_1 = arith.constant 0 : i32
    return %c0_i32, %c0_i32_0 : i32, i32
  }
  func.func @transform_12(%arg0: i32) -> (i32, i32) {
    %c0_i32 = arith.constant 0 : i32
    %c0_i32_0 = arith.constant 0 : i32
    %c0_i32_1 = arith.constant 0 : i32
    return %c0_i32, %c0_i32_0 : i32, i32
  }
  func.func @transform_13(%arg0: i32) -> (i32, i32) {
    %c0_i32 = arith.constant 0 : i32
    %c0_i32_0 = arith.constant 0 : i32
    return %arg0, %c0_i32 : i32, i32
  }
}

</mosaic_0001>

<bundles_post_ra>
// kernel: tpu_custom_call.1
= control target key start
LH: loop header
LB: loop body
LE: loop exit
PB: predicated region body
PF: predicated region fallthrough
CT: control target
= control target key end

     0   :  { %18 = vsyncpa [#allocation3], 0  ;;  %s1712_s0 = inlined_call_operand.hbm [shape: bf16[16,32], index: 0, kind: input, shape index: {}]   ;;  %s1713_s1 = inlined_call_operand.hbm [shape: bf16[16,32], index: 1, kind: input, shape index: {}]   ;;  %s1714_s2 = inlined_call_operand.vmem [shape: f32[2,1,8], index: 2, kind: input, shape index: {}]   ;;  %s1715_s3 = inlined_call_operand.hbm [shape: bf16[32,32], index: 3, kind: input, shape index: {}]   ;;  %s1716_s4 = inlined_call_operand.hbm [shape: f32[1,32], index: 4, kind: input, shape index: {}]   ;;  %s1717_s5 = inlined_call_operand.vmem [shape: bf16[32,32], index: 5, kind: input, shape index: {}]   ;;  %s1718_s6 = inlined_call_operand.hbm [shape: f32[1,32], index: 6, kind: input, shape index: {}]   ;;  %s1719_s7 = inlined_call_operand.hbm [shape: bf16[32,32], index: 7, kind: input, shape index: {}]   ;;  %s1720_s8 = inlined_call_operand.hbm [shape: f32[1,32], index: 8, kind: input, shape index: {}]   ;;  %s1721_s9 = inlined_call_operand.vmem [shape: bf16[2,16,32], index: 9, kind: input, shape index: {}]   ;;  %s1722_s10 = inlined_call_operand.vmem [shape: f32[1,32], index: 10, kind: input, shape index: {}]   ;;  %s1723_s11 = inlined_call_operand.vmem [shape: f32[1,32], index: 11, kind: input, shape index: {}]   ;;  %s1724_s12 = inlined_call_operand.vmem [shape: f32[1,32], index: 12, kind: input, shape index: {}]   ;;  %s1725_s13 = inlined_call_operand.hbm [shape: f32[16,32], index: 13, kind: output, shape index: {}]  }
   0x1   :  { %19 = vsyncpa [#allocation6], 0 }
   0x2   :  { %20 = vsyncpa [#allocation9], 0 }
   0x3   :  { %21 = vsyncpa [#allocation12], 0 }
   0x4   :  { %22 = vsyncpa [#allocation4], 0  ;;  %s1370_s25 = smov [#allocation5]   ;;  %s1371_s27 = smov [#allocation8]  }
   0x5   :  { %s40_s26 = sshll.u32 %s1370_s25, 4  ;;  %s67_s28 = sshll.u32 %s1371_s27, 4  ;;  %s41_s26 = int_to_ptr.vmem [resolvable:$true] %s40_s26  ;;  %s1455_s28 = int_to_ptr.vmem [resolvable:$true] %s67_s28 }
   0x6   :  { %s1184_s14 = scalar_lea.hbm %s1713_s1, 128 }
   0x7   :  { %p1185_p0 = scmp.ne.s32.totalorder %s1713_s1, %s1184_s14  ;;  %p1188_p1 = scmp.lt.u32.totalorder %s1184_s14, %s1713_s1 }
   0x9   :  { %p1190_p2 = pnand %p1188_p1, %p1185_p0 }
   0xb   :  { %1193 = shalt.err (!%p1190_p2)
}
   0xc   :  { %s1194_s19 = scalar_lea.vmem %s41_s26, 128  ;;  %p1199_p4 = scmp.lt.s32.totalorder %s41_s26, %s41_s26 }
   0xd   :  { %p1195_p3 = scmp.ne.s32.totalorder %s41_s26, %s1194_s19  ;;  %p1200_p5 = scmp.lt.s32.totalorder %s1194_s19, %s1194_s19 }
   0xf   :  { %p1201_p6 = por %p1200_p5, %p1199_p4 }
  0x11   :  { %p1202_p7 = pnand %p1201_p6, %p1195_p3 }
  0x13   :  { %1205 = shalt.err (!%p1202_p7)
}
  0x14   :  { %s1372_s20 = smov 64   ;;  %s1373_s21 = smov 4  }
  0x15   :  { %46 = dma.hbm_to_vmem [thread:$0]  %s1713_s1, 128, %s41_s26, [#allocation6], %s1372_s20, %s1372_s20, %s1373_s21  }
  0x16   :  { %s1206_s27 = scalar_lea.hbm %s1716_s4, 16 }
  0x17   :  { %p1207_p8 = scmp.ne.s32.totalorder %s1716_s4, %s1206_s27  ;;  %p1210_p9 = scmp.lt.u32.totalorder %s1206_s27, %s1716_s4 }
  0x19   :  { %p1212_p10 = pnand %p1210_p9, %p1207_p8 }
  0x1b   :  { %1215 = shalt.err (!%p1212_p10)
}
  0x1c   :  { %s1216_s16 = scalar_lea.vmem %s1455_s28, 16  ;;  %s1220_s1 = scalar_lea.vmem %s1455_s28, 32 }
  0x1d   :  { %p1217_p11 = scmp.ne.s32.totalorder %s1455_s28, %s1216_s16  ;;  %p1221_p12 = scmp.lt.s32.totalorder %s1455_s28, %s1455_s28 }
  0x1e   :  { %p1222_p13 = scmp.lt.s32.totalorder %s1220_s1, %s1216_s16 }
  0x20   :  { %p1223_p0 = por %p1222_p13, %p1221_p12 }
  0x22   :  { %p1224_p1 = pnand %p1223_p0, %p1217_p11 }
  0x24   :  { %1227 = shalt.err (!%p1224_p1)
}
  0x25   :  { %70 = dma.hbm_to_vmem [thread:$0]  %s1716_s4, 16, %s1455_s28, [#allocation9]  }
  0x26   :  { %s1374_s18 = smov [#allocation11]   ;;  %s1375_s22 = smov [#allocation2]  }
  0x27   :  { %s88_s19 = sshll.u32 %s1374_s18, 4  ;;  %s28_s23 = sshll.u32 %s1375_s22, 4  ;;  %s89_s19 = int_to_ptr.vmem [resolvable:$true] %s88_s19  ;;  %s1490_s23 = int_to_ptr.vmem [resolvable:$true] %s28_s23 }
  0x28   :  { %s1228_s27 = scalar_lea.hbm %s1719_s7, 256 }
  0x29   :  { %p1229_p2 = scmp.ne.s32.totalorder %s1719_s7, %s1228_s27  ;;  %p1232_p3 = scmp.lt.u32.totalorder %s1228_s27, %s1719_s7 }
  0x2b   :  { %p1234_p4 = pnand %p1232_p3, %p1229_p2 }
  0x2d   :  { %1237 = shalt.err (!%p1234_p4)
}
  0x2e   :  { %s1238_s4 = scalar_lea.vmem %s89_s19, 256  ;;  %p1243_p6 = scmp.lt.s32.totalorder %s89_s19, %s89_s19 }
  0x2f   :  { %p1239_p5 = scmp.ne.s32.totalorder %s89_s19, %s1238_s4  ;;  %p1244_p7 = scmp.lt.s32.totalorder %s1238_s4, %s1238_s4 }
  0x31   :  { %p1245_p8 = por %p1244_p7, %p1243_p6 }
  0x33   :  { %p1246_p9 = pnand %p1245_p8, %p1239_p5 }
  0x35   :  { %1249 = shalt.err (!%p1246_p9)
}
  0x36   :  { %94 = dma.hbm_to_vmem [thread:$0]  %s1719_s7, 256, %s89_s19, [#allocation12], %s1372_s20, %s1372_s20, %s1373_s21  }
  0x37   :  { %s1250_s17 = scalar_lea.hbm %s1712_s0, 128 }
  0x38   :  { %p1251_p10 = scmp.ne.s32.totalorder %s1712_s0, %s1250_s17  ;;  %p1254_p11 = scmp.lt.u32.totalorder %s1250_s17, %s1712_s0 }
  0x3a   :  { %p1256_p12 = pnand %p1254_p11, %p1251_p10 }
  0x3c   :  { %1259 = shalt.err (!%p1256_p12)
}
  0x3d   :  { %s1260_s27 = scalar_lea.vmem %s1490_s23, 128  ;;  %p1265_p0 = scmp.lt.s32.totalorder %s1490_s23, %s1490_s23 }
  0x3e   :  { %p1261_p13 = scmp.ne.s32.totalorder %s1490_s23, %s1260_s27  ;;  %p1266_p1 = scmp.lt.s32.totalorder %s1260_s27, %s1260_s27 }
  0x40   :  { %p1267_p2 = por %p1266_p1, %p1265_p0 }
  0x42   :  { %p1268_p3 = pnand %p1267_p2, %p1261_p13 }
  0x44   :  { %1271 = shalt.err (!%p1268_p3)
}
  0x45   :  { %34 = dma.hbm_to_vmem [thread:$0]  %s1712_s0, 128, %s1490_s23, [#allocation3], %s1372_s20, %s1372_s20, %s1373_s21  }
  0x46   :  { %s1376_s29 = smov [#allocation7]   ;;  %s1377_s14 = smov [#allocation10]  }
  0x47   :  { %s54_s30 = sshll.u32 %s1376_s29, 4  ;;  %s79_s15 = sshll.u32 %s1377_s14, 4  ;;  %s55_s30 = int_to_ptr.vmem [resolvable:$true] %s54_s30  ;;  %s80_s15 = int_to_ptr.vmem [resolvable:$true] %s79_s15 }
  0x48   :  { %s1272_s16 = scalar_lea.hbm %s1715_s3, 256 }
  0x49   :  { %p1273_p4 = scmp.ne.s32.totalorder %s1715_s3, %s1272_s16  ;;  %p1276_p5 = scmp.lt.u32.totalorder %s1272_s16, %s1715_s3 }
  0x4b   :  { %p1278_p6 = pnand %p1276_p5, %p1273_p4 }
  0x4d   :  { %1281 = shalt.err (!%p1278_p6)
}
  0x4e   :  { %s1282_s0 = scalar_lea.vmem %s55_s30, 256  ;;  %p1287_p8 = scmp.lt.s32.totalorder %s55_s30, %s55_s30 }
  0x4f   :  { %p1283_p7 = scmp.ne.s32.totalorder %s55_s30, %s1282_s0  ;;  %p1288_p9 = scmp.lt.s32.totalorder %s1282_s0, %s1282_s0 }
  0x51   :  { %p1289_p10 = por %p1288_p9, %p1287_p8 }
  0x53   :  { %p1290_p11 = pnand %p1289_p10, %p1283_p7 }
  0x55   :  { %1293 = shalt.err (!%p1290_p11)
}
  0x56   :  { %60 = dma.hbm_to_vmem [thread:$0]  %s1715_s3, 256, %s55_s30, [#allocation6], %s1372_s20, %s1372_s20, %s1373_s21  }
  0x57   :  { %s1294_s27 = scalar_lea.hbm %s1718_s6, 16 }
  0x58   :  { %p1295_p12 = scmp.ne.s32.totalorder %s1718_s6, %s1294_s27  ;;  %p1298_p13 = scmp.lt.u32.totalorder %s1294_s27, %s1718_s6 }
  0x5a   :  { %p1300_p0 = pnand %p1298_p13, %p1295_p12 }
  0x5c   :  { %1303 = shalt.err (!%p1300_p0)
}
  0x5d   :  { %s1304_s4 = scalar_lea.vmem %s80_s15, 16  ;;  %s1308_s28 = scalar_lea.vmem %s80_s15, 32 }
  0x5e   :  { %p1305_p1 = scmp.ne.s32.totalorder %s80_s15, %s1304_s4  ;;  %p1309_p2 = scmp.lt.s32.totalorder %s80_s15, %s80_s15 }
  0x5f   :  { %p1310_p3 = scmp.lt.s32.totalorder %s1308_s28, %s1304_s4 }
  0x61   :  { %p1311_p4 = por %p1310_p3, %p1309_p2 }
  0x63   :  { %p1312_p5 = pnand %p1311_p4, %p1305_p1 }
  0x65   :  { %1315 = shalt.err (!%p1312_p5)
}
  0x66   :  { %82 = dma.hbm_to_vmem [thread:$0]  %s1718_s6, 16, %s80_s15, [#allocation9]  }
  0x67   :  { %s1378_s21 = smov [#allocation13]   ;;  %s1316_s26 = scalar_lea.hbm %s1720_s8, 16 }
  0x68   :  { %s101_s30 = sshll.u32 %s1378_s21, 4  ;;  %p1317_p6 = scmp.ne.s32.totalorder %s1720_s8, %s1316_s26  ;;  %s102_s30 = int_to_ptr.vmem [resolvable:$true] %s101_s30 }
  0x69   :  { %p1320_p7 = scmp.lt.u32.totalorder %s1316_s26, %s1720_s8 }
  0x6b   :  { %p1322_p8 = pnand %p1320_p7, %p1317_p6 }
  0x6d   :  { %1325 = shalt.err (!%p1322_p8)
}
  0x6e   :  { %s1326_s22 = scalar_lea.vmem %s102_s30, 16  ;;  %s1330_s6 = scalar_lea.vmem %s102_s30, 32 }
  0x6f   :  { %p1327_p9 = scmp.ne.s32.totalorder %s102_s30, %s1326_s22  ;;  %p1331_p10 = scmp.lt.s32.totalorder %s102_s30, %s102_s30 }
  0x70   :  { %p1332_p11 = scmp.lt.s32.totalorder %s1330_s6, %s1326_s22 }
  0x72   :  { %p1333_p12 = por %p1332_p11, %p1331_p10 }
  0x74   :  { %p1334_p13 = pnand %p1333_p12, %p1327_p9 }
  0x76   :  { %1337 = shalt.err (!%p1334_p13)
}
  0x77   :  { %104 = dma.hbm_to_vmem [thread:$0]  %s1720_s8, 16, %s102_s30, [#allocation12]  }
  0x78   :  { %1360 = dma.done.wait [#allocation3], 128  }
  0x79   :  { %1361 = vsyncadd [#allocation3], 4294967168 }
  0x7a   :  { %1362 = dma.done.wait [#allocation6], 384  }
  0x7b   :  { %1363 = vsyncadd [#allocation6], 4294966912 }
  0x7c   :  { %1364 = dma.done.wait [#allocation9], 32  }
  0x7d   :  { %1365 = vsyncadd [#allocation9], 4294967264 }
  0x7e   :  { %1366 = dma.done.wait [#allocation12], 272  }
  0x7f   :  { %1367 = vsyncadd [#allocation12], 4294967024  ;;  %v1379_v0 = vmov 0.0   ;;  %vm1380_vm0 = vmmov 0   ;;  %v1153_v1 = vld [vmem:[%s1717_s5] sm:$0xff]   ;;  %v1154_v2 = vld [vmem:[%s1717_s5 + $0x8] sm:$0xff]  }
  0x80   :  { %1062 = vmatprep.subr.bf16.mxu1 %v1379_v0  ;;  %1054 = vmatprep.subr.bf16.mxu0 %v1379_v0  ;;  %v1155_v3 = vld [vmem:[#allocation7] sm:$0xff]   ;;  %v1157_v4 = vld [vmem:[#allocation7 + $0x8] sm:$0xff]   ;;  %v1156_v5 = vld [vmem:[#allocation2] sm:$0xff]   ;;  %vm167_vm1 = vcmask 261120   ;;  %vm368_vm2 = vcmask 130048   ;;  %s1381_s5 = smov 112  }
  0x81   :  { %1066 = vmatprep.mubr.msk.bf16.mxu1 %vm1380_vm0, %v1379_v0  ;;  %1058 = vmatprep.mubr.msk.bf16.mxu0 %vm1380_vm0, %v1379_v0  ;;  %v1158_v6 = vld [vmem:[#allocation11] sm:$0xff]   ;;  %v1159_v7 = vld [vmem:[#allocation11 + $0x8] sm:$0xff]   ;;  %v997_v9 = vld [vmem:[#allocation10] ss:$0 sm:$0xff]  ;;  %vm489_vm3 = vcmask 1043456   ;;  %vm461_vm4 = vcmask 64512  }
  0x82   :  { %1063 = vmatpush3.bf16.msra.mxu1 %v1153_v1  ;;  %1055 = vmatpush3.bf16.msra.mxu0 %v1155_v3  ;;  %v1590_v8 = vld [vmem:[#allocation5] sm:$0xff]   ;;  %v992_v14 = vld [vmem:[#allocation8] ss:$0 sm:$0xff]  ;;  %v1001_v29 = vld [vmem:[#allocation13] ss:$0 sm:$0xff]  ;;  %s1382_s26 = smov [#allocation14]  }
  0x83   :  { %1064 = vmatprep.subr.bf16.mxu1 %v1379_v0  ;;  %1056 = vmatprep.subr.bf16.mxu0 %v1379_v0  ;;  %v1620_v40 = vld [vmem:[%s1714_s2] ss:$0 sm:$0xff]  ;;  %v1625_v42 = vld [vmem:[%s1714_s2 + $0x1] ss:$0 sm:$0xff]  ;;  %s977_s17 = sshll.u32 %s1382_s26, 4  ;;  %s978_s17 = int_to_ptr.vmem [resolvable:$true] %s977_s17 }
  0x84   :  { %s1338_s18 = scalar_lea.vmem %s978_s17, 256  ;;  %p1343_p1 = scmp.lt.s32.totalorder %s978_s17, %s978_s17 }
  0x85   :  { %p1339_p0 = scmp.ne.s32.totalorder %s978_s17, %s1338_s18  ;;  %p1344_p2 = scmp.lt.s32.totalorder %s1338_s18, %s1338_s18 }
  0x86   :  { %1065 = vmatpush3.bf16.msra.mxu1 %v1154_v2  ;;  %1057 = vmatpush3.bf16.msra.mxu0 %v1157_v4 }
  0x87   :  { %1078 = vmatprep.subr.bf16.mxu1 %v1379_v0  ;;  %1070 = vmatprep.subr.bf16.mxu0 %v1379_v0  ;;  %p1345_p3 = por %p1344_p2, %p1343_p1 }
  0x89   :  { %1067 = vmatmul.mubr.msk.bf16.vlgmr.msra.gmra.mrb[0].mxu1 %vm167_vm1, %v1156_v5  ;;  %1059 = vmatmul.mubr.msk.bf16.vlgmr.msra.gmra.mrb[0].mxu0 %vm167_vm1, %v1156_v5  ;;  %p1346_p4 = pnand %p1345_p3, %p1339_p0 }
  0x8a   :  { %1080 = vmatprep.mubr.msk.bf16.mxu1 %vm1380_vm0, %v1379_v0  ;;  %1071 = vmatpush3.bf16.msra.mxu0 %v1158_v6 }
  0x8b   :  { %1074 = vmatprep.mubr.msk.bf16.mxu0 %vm1380_vm0, %v1379_v0  ;;  %1072 = vmatprep.subr.bf16.mxu0 %v1379_v0 }
  0x8e   :  { %1073 = vmatpush3.bf16.msra.mxu0 %v1159_v7 }
  0x8f   :  { %1084 = vmatprep.subr.bf16.mxu0 %v1379_v0 }
  0x91   :  { %1075 = vmatmul.mubr.msk.bf16.vlgmr.msra.gmra.mrb[4].mxu0 %vm167_vm1, %v1590_v8 }
  0x92   :  { %1086 = vmatprep.mubr.msk.bf16.mxu0 %vm1380_vm0, %v1379_v0 }
 0x15c   :  { %v269_v10 = vpop.f32.mrb[0].mxu1  ;;  %v205_v15 = vpop.f32.mrb[0].mxu0 }
 0x15d   :  { %v270_v11 = vadd.f32 %v997_v9, %v269_v10  ;;  %v1068_v12 = vpop.f32.mrb[1].mxu1  ;;  %v1060_v19 = vpop.f32.mrb[1].mxu0  ;;  %v206_v23 = vadd.f32 %v992_v14, %v205_v15 }
 0x15e   :  { %v272_v13 = vpop.f32.mrb[2].mxu1  ;;  %v208_v20 = vpop.f32.mrb[2].mxu0 }
 0x15f   :  { %v352_v16 = vpack.c.bf16 %v270_v11, %v270_v11  ;;  %v273_v17 = vadd.f32 %v997_v9, %v272_v13  ;;  %v1069_v18 = vpop.f32.mrb[3].mxu1  ;;  %v1061_v24 = vpop.f32.mrb[3].mxu0  ;;  %v350_v26 = vpack.c.bf16 %v206_v23, %v206_v23  ;;  %v209_v27 = vadd.f32 %v992_v14, %v208_v20 }
 0x161   :  { %v373_v21 = vsel %vm368_vm2, %v352_v16, 0  ;;  %v353_v22 = vpack.c.bf16 %v273_v17, %v273_v17  ;;  %v351_v28 = vpack.c.bf16 %v209_v27, %v209_v27 }
 0x162   :  { %1079 = vmatpush3.bf16.xpose.msra.mxu1 %v373_v21 }
 0x163   :  { %v419_v25 = vsel %vm368_vm2, %v353_v22, 0  ;;  %638 = vrot.lane.b32.xlu1 %v353_v22, %s1381_s5  ;;  %1090 = vmatprep.subr.bf16.mxu1 %v1379_v0 }
 0x164   :  { %1085 = vmatpush3.bf16.xpose.msra.mxu0 %v419_v25  ;;  %v341_v30 = vpop.f32.mrb[4].mxu0 }
 0x165   :  { %1096 = vmatprep.subr.bf16.mxu0 %v1379_v0  ;;  %v342_v31 = vadd.f32 %v1001_v29, %v341_v30  ;;  %v1076_v32 = vpop.f32.mrb[5].mxu0 }
 0x166   :  { %v344_v33 = vpop.f32.mrb[6].mxu0 }
 0x167   :  { %v1607_v34 = vpack.c.bf16 %v342_v31, %v342_v31  ;;  %v345_v35 = vadd.f32 %v1001_v29, %v344_v33  ;;  %v1077_v36 = vpop.f32.mrb[7].mxu0 }
 0x169   :  { %1081 = vmatmul.mubr.msk.bf16.vlgmr.msra.gmra.mrb[4].mxu1 %vm368_vm2, %v350_v26  ;;  %v491_v37 = vsel %vm489_vm3, %v1607_v34, 0  ;;  %v1611_v38 = vpack.c.bf16 %v345_v35, %v345_v35 }
 0x16a   :  { %1092 = vmatprep.mubr.msk.bf16.mxu1 %vm1380_vm0, %v1379_v0  ;;  %1091 = vmatpush3.bf16.msra.mxu1 %v491_v37 }
 0x16b   :  { %1087 = vmatmul.mubr.msk.bf16.vlgmr.msra.gmra.mrb[8].mxu0 %vm368_vm2, %v351_v28  ;;  %v537_v39 = vsel %vm489_vm3, %v1611_v38, 0  ;;  %1102 = vmatprep.subr.bf16.mxu1 %v1379_v0 }
 0x16c   :  { %1098 = vmatprep.mubr.msk.bf16.mxu0 %vm1380_vm0, %v1379_v0  ;;  %1097 = vmatpush3.bf16.msra.mxu0 %v537_v39 }
 0x16d   :  { %1108 = vmatprep.subr.bf16.mxu0 %v1379_v0 }
 0x1d5   :  { %v639_v1 = vpop.permute.xlu1 %638 }
 0x1d6   :  { %v644_v13 = vsel %vm368_vm2, %v639_v1, 0 }
 0x23c   :  { %v409_v41 = vpop.f32.mrb[4].mxu1 }
 0x23d   :  { %v410_v43 = vadd.f32 %v1620_v40, %v409_v41  ;;  %v1082_v44 = vpop.f32.mrb[5].mxu1 }
 0x23e   :  { %v412_v45 = vpop.f32.mrb[6].mxu1  ;;  %v455_v46 = vpop.f32.mrb[8].mxu0 }
 0x23f   :  { %v456_v47 = vadd.f32 %v1625_v42, %v455_v46  ;;  %v1083_v48 = vpop.f32.mrb[7].mxu1  ;;  %v1088_v49 = vpop.f32.mrb[9].mxu0  ;;  %v462_v50 = vsel %vm461_vm4, %v410_v43, -inf }
 0x240   :  { %463 = vmax.xlane.f32.xlu0 %v462_v50  ;;  %v458_v51 = vpop.f32.mrb[10].mxu0 }
 0x241   :  { %v1089_v52 = vpop.f32.mrb[11].mxu0  ;;  %v465_v53 = vsel %vm461_vm4, %v456_v47, -inf }
 0x244   :  { %466 = vmax.xlane.f32.xlu0 %v465_v53 }
 0x25a   :  { %586 = vrot.lane.b32.xlu0 %v352_v16, %s1381_s5 }
 0x2cd   :  { %v464_v54 = vpop.xlane.xlu0 %463 }
 0x2ce   :  { %v468_v55 = vsub.f32 %v410_v43, %v464_v54 }
 0x2d0   :  { %v470_v56 = vmul.f32 1.442695, %v468_v55 }
 0x2d1   :  { %v467_v57 = vpop.xlane.xlu0 %466 }
 0x2d2   :  { %1164 = vpow2.f32 %v470_v56  ;;  %v469_v58 = vsub.f32 %v456_v47, %v467_v57 }
 0x2d4   :  { %v472_v59 = vmul.f32 1.442695, %v469_v58 }
 0x2d5   :  { %v587_v6 = vpop.permute.xlu0 %586 }
 0x2d6   :  { %1166 = vpow2.f32 %v472_v59  ;;  %v592_v10 = vsel %vm368_vm2, %v587_v6, 0 }
 0x2dc   :  { %v1165_v60 = vpop.eup %1164 }
 0x2dd   :  { %v474_v61 = vsel %vm461_vm4, %v1165_v60, 0.0 }
 0x2de   :  { %475 = vadd.xlane.f32.xlu1 %v474_v61 }
 0x2e0   :  { %v1167_v62 = vpop.eup %1166 }
 0x2e1   :  { %v477_v63 = vsel %vm461_vm4, %v1167_v62, 0.0 }
 0x2e2   :  { %478 = vadd.xlane.f32.xlu1 %v477_v63 }
 0x2f3   :  { %583 = vrot.lane.b32.xlu1 %v350_v26, %s1381_s5 }
 0x2f7   :  { %635 = vrot.lane.b32.xlu1 %v351_v28, %s1381_s5 }
 0x36b   :  { %v476_v2 = vpop.xlane.xlu1 %475 }
 0x36c   :  { %1168 = vrcp.f32 %v476_v2 }
 0x36f   :  { %v479_v3 = vpop.xlane.xlu1 %478 }
 0x370   :  { %1170 = vrcp.f32 %v479_v3 }
 0x373   :  { %v584_v14 = vpop.permute.xlu1 %583 }
 0x376   :  { %v1169_v4 = vpop.eup %1168 }
 0x377   :  { %v482_v5 = vmul.f32 %v1169_v4, %v1165_v60  ;;  %v636_v15 = vpop.permute.xlu1 %635  ;;  %v1162_v60 = vld [vmem:[%s1721_s9 + $0x8] sm:$0xff]  }
 0x379   :  { %v484_v7 = vpack.c.bf16 %v482_v5, %v482_v5 }
 0x37a   :  { %v1171_v9 = vpop.eup %1170 }
 0x37b   :  { %v483_v11 = vmul.f32 %v1171_v9, %v1167_v62  ;;  %1093 = vmatmul.mubr.msk.bf16.vlgmr.msra.gmra.mrb[8].mxu1 %vm461_vm4, %v484_v7 }
 0x37c   :  { %1103 = vmatpush3.bf16.xpose.msra.mxu1 %v592_v10  ;;  %1104 = vmatprep.mubr.msk.bf16.mxu1 %vm1380_vm0, %v1379_v0 }
 0x37d   :  { %v485_v12 = vpack.c.bf16 %v483_v11, %v483_v11  ;;  %1114 = vmatprep.subr.bf16.mxu1 %v1379_v0 }
 0x37f   :  { %1099 = vmatmul.mubr.msk.bf16.vlgmr.msra.gmra.mrb[12].mxu0 %vm461_vm4, %v485_v12  ;;  %v1022_v12 = vld [vmem:[%s1722_s10] ss:$0 sm:$0xff] }
 0x380   :  { %1109 = vmatpush3.bf16.xpose.msra.mxu0 %v644_v13  ;;  %1110 = vmatprep.mubr.msk.bf16.mxu0 %vm1380_vm0, %v1379_v0 }
 0x381   :  { %1120 = vmatprep.subr.bf16.mxu0 %v1379_v0 }
 0x383   :  { %1105 = vmatmul.mubr.msk.bf16.vlgmr.msra.gmra.mrb[12].mxu1 %vm368_vm2, %v584_v14 }
 0x384   :  { %1116 = vmatprep.mubr.msk.bf16.mxu1 %vm1380_vm0, %v1379_v0 }
 0x387   :  { %1111 = vmatmul.mubr.msk.bf16.vlgmr.msra.gmra.mrb[16].mxu0 %vm368_vm2, %v636_v15  ;;  %v921_v15 = vunpack.c.l.bf16 %v1590_v8 }
 0x388   :  { %1122 = vmatprep.mubr.msk.bf16.mxu0 %vm1380_vm0, %v1379_v0 }
 0x44e   :  { %v1652_v16 = vpop.f32.mrb[8].mxu1 }
 0x44f   :  { %v1094_v17 = vpop.f32.mrb[9].mxu1 }
 0x450   :  { %v530_v18 = vpop.f32.mrb[10].mxu1 }
 0x451   :  { %v1095_v19 = vpop.f32.mrb[11].mxu1 }
 0x452   :  { %v573_v20 = vpop.f32.mrb[12].mxu0 }
 0x453   :  { %v579_v21 = vpack.c.bf16 %v573_v20, %v1652_v16  ;;  %v1100_v22 = vpop.f32.mrb[13].mxu0  ;;  %v922_v20 = vunpack.c.h.bf16 %v1590_v8 }
 0x454   :  { %v576_v23 = vpop.f32.mrb[14].mxu0 }
 0x455   :  { %v1101_v24 = vpop.f32.mrb[15].mxu0 }
 0x456   :  { %v628_v25 = vpop.f32.mrb[12].mxu1 }
 0x457   :  { %v629_v26 = vadd.f32 %v1620_v40, %v628_v25  ;;  %v1106_v27 = vpop.f32.mrb[13].mxu1 }
 0x458   :  { %v631_v28 = vpop.f32.mrb[14].mxu1 }
 0x459   :  { %v1107_v29 = vpop.f32.mrb[15].mxu1  ;;  %v686_v30 = vsel %vm461_vm4, %v629_v26, -inf }
 0x45a   :  { %687 = vmax.xlane.f32.xlu0 %v686_v30  ;;  %v680_v31 = vpop.f32.mrb[16].mxu0 }
 0x45b   :  { %v681_v32 = vadd.f32 %v1625_v42, %v680_v31  ;;  %v1112_v33 = vpop.f32.mrb[17].mxu0 }
 0x45c   :  { %v683_v35 = vpop.f32.mrb[18].mxu0 }
 0x45d   :  { %v1113_v36 = vpop.f32.mrb[19].mxu0  ;;  %v689_v37 = vsel %vm461_vm4, %v681_v32, -inf }
 0x45e   :  { %690 = vmax.xlane.f32.xlu1 %v689_v37 }
 0x46f   :  { %760 = vrot.lane.b32.xlu1 %v1611_v38, %s1381_s5 }
 0x4e7   :  { %v688_v39 = vpop.xlane.xlu0 %687 }
 0x4e8   :  { %v692_v40 = vsub.f32 %v629_v26, %v688_v39 }
 0x4ea   :  { %v694_v41 = vmul.f32 1.442695, %v692_v40 }
 0x4eb   :  { %v691_v43 = vpop.xlane.xlu1 %690 }
 0x4ec   :  { %1172 = vpow2.f32 %v694_v41  ;;  %v693_v44 = vsub.f32 %v681_v32, %v691_v43 }
 0x4ee   :  { %v696_v45 = vmul.f32 1.442695, %v693_v44 }
 0x4ef   :  { %v761_v46 = vpop.permute.xlu1 %760 }
 0x4f0   :  { %1174 = vpow2.f32 %v696_v45  ;;  %v766_v42 = vsel %vm489_vm3, %v761_v46, 0  ;;  %v1023_v45 = vld [vmem:[%s1723_s11] ss:$0 sm:$0xff] }
 0x4f1   :  { %1121 = vmatpush3.bf16.msra.mxu0 %v766_v42 }
 0x4f2   :  { %1132 = vmatprep.subr.bf16.mxu0 %v1379_v0 }
 0x4f6   :  { %v1173_v47 = vpop.eup %1172 }
 0x4f7   :  { %v698_v48 = vsel %vm461_vm4, %v1173_v47, 0.0 }
 0x4f8   :  { %699 = vadd.xlane.f32.xlu0 %v698_v48 }
 0x4fa   :  { %v1175_v49 = vpop.eup %1174 }
 0x4fb   :  { %v701_v38 = vsel %vm461_vm4, %v1175_v49, 0.0 }
 0x4fc   :  { %702 = vadd.xlane.f32.xlu0 %v701_v38 }
 0x512   :  { %711 = vrot.lane.b32.xlu0 %v1607_v34, %s1381_s5  ;;  %v1161_v34 = vld [vmem:[%s1721_s9] sm:$0xff]  }
 0x585   :  { %v700_v50 = vpop.xlane.xlu0 %699 }
 0x586   :  { %1176 = vrcp.f32 %v700_v50 }
 0x589   :  { %v703_v51 = vpop.xlane.xlu0 %702 }
 0x58a   :  { %1178 = vrcp.f32 %v703_v51 }
 0x58d   :  { %v712_v52 = vpop.permute.xlu0 %711 }
 0x58e   :  { %v717_v53 = vsel %vm489_vm3, %v712_v52, 0 }
 0x58f   :  { %1115 = vmatpush3.bf16.msra.mxu1 %v717_v53 }
 0x590   :  { %v1177_v54 = vpop.eup %1176  ;;  %1126 = vmatprep.subr.bf16.mxu1 %v1379_v0 }
 0x591   :  { %v706_v55 = vmul.f32 %v1177_v54, %v1173_v47  ;;  %v1024_v47 = vld [vmem:[%s1724_s12] ss:$0 sm:$0xff] }
 0x593   :  { %v708_v56 = vpack.c.bf16 %v706_v55, %v706_v55 }
 0x594   :  { %v1179_v57 = vpop.eup %1178 }
 0x595   :  { %v707_v58 = vmul.f32 %v1179_v57, %v1175_v49  ;;  %1117 = vmatmul.mubr.msk.bf16.vlgmr.msra.gmra.mrb[16].mxu1 %vm461_vm4, %v708_v56 }
 0x596   :  { %1128 = vmatprep.mubr.msk.bf16.mxu1 %vm1380_vm0, %v1379_v0  ;;  %1127 = vmatpush3.bf16.msra.mxu1 %v1162_v60 }
 0x597   :  { %v709_v59 = vpack.c.bf16 %v707_v58, %v707_v58 }
 0x599   :  { %1123 = vmatmul.mubr.msk.bf16.vlgmr.msra.gmra.mrb[20].mxu0 %vm461_vm4, %v709_v59 }
 0x59a   :  { %1133 = vmatpush3.bf16.msra.mxu0 %v1161_v34  ;;  %1134 = vmatprep.mubr.msk.bf16.mxu0 %vm1380_vm0, %v1379_v0 }
 0x5a1   :  { %1135 = vmatmul.mubr.msk.bf16.vlgmr.msra.gmra.mrb[24].mxu0 %vm368_vm2, %v579_v21 }
 0x668   :  { %v753_v61 = vpop.f32.mrb[16].mxu1 }
 0x669   :  { %v1118_v62 = vpop.f32.mrb[17].mxu1 }
 0x66a   :  { %v756_v63 = vpop.f32.mrb[18].mxu1 }
 0x66b   :  { %v1119_v1 = vpop.f32.mrb[19].mxu1 }
 0x66c   :  { %v802_v2 = vpop.f32.mrb[20].mxu0 }
 0x66d   :  { %v808_v3 = vpack.c.bf16 %v802_v2, %v753_v61  ;;  %v1124_v4 = vpop.f32.mrb[21].mxu0 }
 0x66e   :  { %v805_v5 = vpop.f32.mrb[22].mxu0 }
 0x66f   :  { %v1125_v6 = vpop.f32.mrb[23].mxu0  ;;  %1129 = vmatmul.mubr.msk.bf16.vlgmr.msra.gmra.mrb[20].mxu1 %vm368_vm2, %v808_v3 }
 0x674   :  { %v905_v7 = vpop.f32.mrb[24].mxu0 }
 0x675   :  { %v1136_v0 = vpop.f32.mrb[25].mxu0 }
 0x676   :  { %v908_v9 = vpop.f32.mrb[26].mxu0 }
 0x677   :  { %v1137_v10 = vpop.f32.mrb[27].mxu0 }
 0x742   :  { %v855_v11 = vpop.f32.mrb[20].mxu1 }
 0x743   :  { %v906_v13 = vadd.f32 %v905_v7, %v855_v11  ;;  %v1130_v14 = vpop.f32.mrb[21].mxu1 }
 0x744   :  { %v858_v16 = vpop.f32.mrb[22].mxu1 }
 0x745   :  { %v919_v17 = vadd.f32 %v1022_v12, %v906_v13  ;;  %v909_v18 = vadd.f32 %v908_v9, %v858_v16  ;;  %v1131_v19 = vpop.f32.mrb[23].mxu1 }
 0x747   :  { %v920_v21 = vadd.f32 %v1022_v12, %v909_v18  ;;  %v923_v22 = vadd.f32 %v921_v15, %v919_v17 }
 0x749   :  { %v925_v23 = vsel %vm167_vm1, %v923_v22, 0.0  ;;  %v924_v24 = vadd.f32 %v922_v20, %v920_v21 }
 0x74a   :  { %926 = vadd.xlane.f32.xlu1 %v925_v23 }
 0x74b   :  { %v928_v25 = vsel %vm167_vm1, %v924_v24, 0.0 }
 0x74c   :  { %929 = vadd.xlane.f32.xlu0 %v928_v25 }
 0x7d7   :  { %v927_v26 = vpop.xlane.xlu1 %926 }
 0x7d8   :  { %v932_v27 = vmul.f32 0.03125, %v927_v26 }
 0x7d9   :  { %v930_v28 = vpop.xlane.xlu0 %929 }
 0x7da   :  { %v934_v29 = vsub.f32 %v923_v22, %v932_v27  ;;  %v933_v30 = vmul.f32 0.03125, %v930_v28 }
 0x7dc   :  { %v935_v31 = vsub.f32 %v924_v24, %v933_v30  ;;  %v936_v32 = vmul.f32 %v934_v29, %v934_v29 }
 0x7de   :  { %v938_v33 = vsel %vm167_vm1, %v936_v32, 0.0  ;;  %v937_v35 = vmul.f32 %v935_v31, %v935_v31 }
 0x7df   :  { %939 = vadd.xlane.f32.xlu0 %v938_v33 }
 0x7e0   :  { %v941_v8 = vsel %vm167_vm1, %v937_v35, 0.0 }
 0x7e1   :  { %942 = vadd.xlane.f32.xlu1 %v941_v8 }
 0x86c   :  { %v940_v36 = vpop.xlane.xlu0 %939 }
 0x86d   :  { %v944_v37 = vmul.f32 0.03125, %v940_v36 }
 0x86e   :  { %v943_v39 = vpop.xlane.xlu1 %942 }
 0x86f   :  { %v946_v40 = vadd.f32 1e-12, %v944_v37  ;;  %v945_v41 = vmul.f32 0.03125, %v943_v39 }
 0x871   :  { %1180 = vrsqrt.f32 %v946_v40  ;;  %v947_v43 = vadd.f32 1e-12, %v945_v41 }
 0x873   :  { %1182 = vrsqrt.f32 %v947_v43 }
 0x87b   :  { %v1181_v44 = vpop.eup %1180 }
 0x87c   :  { %v950_v46 = vmul.f32 %v1181_v44, %v934_v29 }
 0x87d   :  { %v1183_v42 = vpop.eup %1182 }
 0x87e   :  { %v959_v48 = vmul.f32 %v1023_v45, %v950_v46  ;;  %v951_v49 = vmul.f32 %v1183_v42, %v935_v31 }
 0x880   :  { %v960_v38 = vmul.f32 %v1023_v45, %v951_v49  ;;  %v968_v50 = vadd.f32 %v1024_v47, %v959_v48 }
 0x882   :  { %v969_v51 = vadd.f32 %v1024_v47, %v960_v38  ;;  %970 = vst.msk [vmem:[#allocation14] sm:$0xff] %vm167_vm1, %v968_v50 }
 0x884   :  { %971 = vst.msk [vmem:[#allocation14 + $0x8] sm:$0xff] %vm167_vm1, %v969_v51 }
 0x885   :  { %1349 = shalt.err (!%p1346_p4)
}
 0x886   :  { %s1350_s0 = scalar_lea.hbm %s1725_s13, 256 }
 0x887   :  { %p1351_p5 = scmp.ne.s32.totalorder %s1725_s13, %s1350_s0  ;;  %p1354_p6 = scmp.lt.u32.totalorder %s1350_s0, %s1725_s13 }
 0x889   :  { %p1356_p7 = pnand %p1354_p6, %p1351_p5 }
 0x88b   :  { %1359 = shalt.err (!%p1356_p7)
}
 0x88c   :  { %s1383_s24 = smov 128   ;;  %s1384_s8 = smov 8  }
 0x88d   :  { %983 = dma.vmem_to_hbm [thread:$0]  %s978_s17, 256, %s1725_s13, [#allocation4], %s1383_s24, %s1383_s24, %s1384_s8  }
 0x88e   :  { %1368 = dma.done.wait [#allocation4], 256  }
 0x88f   :  { %1369 = vsyncadd [#allocation4], 4294967040 }
 0x890   :  { %987 = vsyncpa [#allocation3], 1 }
 0x891   :  { %988 = vsyncpa [#allocation6], 1 }
 0x892   :  { %989 = vsyncpa [#allocation9], 1 }
 0x893   :  { %990 = vsyncpa [#allocation12], 1 }
 0x894   :  { %991 = vsyncpa [#allocation4], 1 }

// kernel: tpu_custom_call.1
= control target key start
LH: loop header
LB: loop body
LE: loop exit
PB: predicated region body
PF: predicated region fallthrough
CT: control target
= control target key end

     0   :  { %18 = vsyncpa [#allocation3], 0  ;;  %s1712_s0 = inlined_call_operand.hbm [shape: bf16[16,32], index: 0, kind: input, shape index: {}]   ;;  %s1713_s1 = inlined_call_operand.hbm [shape: bf16[16,32], index: 1, kind: input, shape index: {}]   ;;  %s1714_s2 = inlined_call_operand.vmem [shape: f32[2,1,8], index: 2, kind: input, shape index: {}]   ;;  %s1715_s3 = inlined_call_operand.hbm [shape: bf16[32,32], index: 3, kind: input, shape index: {}]   ;;  %s1716_s4 = inlined_call_operand.hbm [shape: f32[1,32], index: 4, kind: input, shape index: {}]   ;;  %s1717_s5 = inlined_call_operand.vmem [shape: bf16[32,32], index: 5, kind: input, shape index: {}]   ;;  %s1718_s6 = inlined_call_operand.hbm [shape: f32[1,32], index: 6, kind: input, shape index: {}]   ;;  %s1719_s7 = inlined_call_operand.hbm [shape: bf16[32,32], index: 7, kind: input, shape index: {}]   ;;  %s1720_s8 = inlined_call_operand.hbm [shape: f32[1,32], index: 8, kind: input, shape index: {}]   ;;  %s1721_s9 = inlined_call_operand.vmem [shape: bf16[2,16,32], index: 9, kind: input, shape index: {}]   ;;  %s1722_s10 = inlined_call_operand.vmem [shape: f32[1,32], index: 10, kind: input, shape index: {}]   ;;  %s1723_s11 = inlined_call_operand.vmem [shape: f32[1,32], index: 11, kind: input, shape index: {}]   ;;  %s1724_s12 = inlined_call_operand.vmem [shape: f32[1,32], index: 12, kind: input, shape index: {}]   ;;  %s1725_s13 = inlined_call_operand.hbm [shape: f32[16,32], index: 13, kind: output, shape index: {}]  }
   0x1   :  { %19 = vsyncpa [#allocation6], 0 }
   0x2   :  { %20 = vsyncpa [#allocation9], 0 }
   0x3   :  { %21 = vsyncpa [#allocation12], 0 }
   0x4   :  { %22 = vsyncpa [#allocation4], 0  ;;  %s1370_s25 = smov [#allocation5]   ;;  %s1371_s27 = smov [#allocation8]  }
   0x5   :  { %s40_s26 = sshll.u32 %s1370_s25, 4  ;;  %s67_s28 = sshll.u32 %s1371_s27, 4  ;;  %s41_s26 = int_to_ptr.vmem [resolvable:$true] %s40_s26  ;;  %s1455_s28 = int_to_ptr.vmem [resolvable:$true] %s67_s28 }
   0x6   :  { %s1184_s14 = scalar_lea.hbm %s1713_s1, 128 }
   0x7   :  { %p1185_p0 = scmp.ne.s32.totalorder %s1713_s1, %s1184_s14  ;;  %p1188_p1 = scmp.lt.u32.totalorder %s1184_s14, %s1713_s1 }
   0x9   :  { %p1190_p2 = pnand %p1188_p1, %p1185_p0 }
   0xb   :  { %1193 = shalt.err (!%p1190_p2)
}
   0xc   :  { %s1194_s19 = scalar_lea.vmem %s41_s26, 128  ;;  %p1199_p4 = scmp.lt.s32.totalorder %s41_s26, %s41_s26 }
   0xd   :  { %p1195_p3 = scmp.ne.s32.totalorder %s41_s26, %s1194_s19  ;;  %p1200_p5 = scmp.lt.s32.totalorder %s1194_s19, %s1194_s19 }
   0xf   :  { %p1201_p6 = por %p1200_p5, %p1199_p4 }
  0x11   :  { %p1202_p7 = pnand %p1201_p6, %p1195_p3 }
  0x13   :  { %1205 = shalt.err (!%p1202_p7)
}
  0x14   :  { %s1372_s20 = smov 64   ;;  %s1373_s21 = smov 4  }
  0x15   :  { %46 = dma.hbm_to_vmem [thread:$0]  %s1713_s1, 128, %s41_s26, [#allocation6], %s1372_s20, %s1372_s20, %s1373_s21  }
  0x16   :  { %s1206_s27 = scalar_lea.hbm %s1716_s4, 16 }
  0x17   :  { %p1207_p8 = scmp.ne.s32.totalorder %s1716_s4, %s1206_s27  ;;  %p1210_p9 = scmp.lt.u32.totalorder %s1206_s27, %s1716_s4 }
  0x19   :  { %p1212_p10 = pnand %p1210_p9, %p1207_p8 }
  0x1b   :  { %1215 = shalt.err (!%p1212_p10)
}
  0x1c   :  { %s1216_s16 = scalar_lea.vmem %s1455_s28, 16  ;;  %s1220_s1 = scalar_lea.vmem %s1455_s28, 32 }
  0x1d   :  { %p1217_p11 = scmp.ne.s32.totalorder %s1455_s28, %s1216_s16  ;;  %p1221_p12 = scmp.lt.s32.totalorder %s1455_s28, %s1455_s28 }
  0x1e   :  { %p1222_p13 = scmp.lt.s32.totalorder %s1220_s1, %s1216_s16 }
  0x20   :  { %p1223_p0 = por %p1222_p13, %p1221_p12 }
  0x22   :  { %p1224_p1 = pnand %p1223_p0, %p1217_p11 }
  0x24   :  { %1227 = shalt.err (!%p1224_p1)
}
  0x25   :  { %70 = dma.hbm_to_vmem [thread:$0]  %s1716_s4, 16, %s1455_s28, [#allocation9]  }
  0x26   :  { %s1374_s18 = smov [#allocation11]   ;;  %s1375_s22 = smov [#allocation2]  }
  0x27   :  { %s88_s19 = sshll.u32 %s1374_s18, 4  ;;  %s28_s23 = sshll.u32 %s1375_s22, 4  ;;  %s89_s19 = int_to_ptr.vmem [resolvable:$true] %s88_s19  ;;  %s1490_s23 = int_to_ptr.vmem [resolvable:$true] %s28_s23 }
  0x28   :  { %s1228_s27 = scalar_lea.hbm %s1719_s7, 256 }
  0x29   :  { %p1229_p2 = scmp.ne.s32.totalorder %s1719_s7, %s1228_s27  ;;  %p1232_p3 = scmp.lt.u32.totalorder %s1228_s27, %s1719_s7 }
  0x2b   :  { %p1234_p4 = pnand %p1232_p3, %p1229_p2 }
  0x2d   :  { %1237 = shalt.err (!%p1234_p4)
}
  0x2e   :  { %s1238_s4 = scalar_lea.vmem %s89_s19, 256  ;;  %p1243_p6 = scmp.lt.s32.totalorder %s89_s19, %s89_s19 }
  0x2f   :  { %p1239_p5 = scmp.ne.s32.totalorder %s89_s19, %s1238_s4  ;;  %p1244_p7 = scmp.lt.s32.totalorder %s1238_s4, %s1238_s4 }
  0x31   :  { %p1245_p8 = por %p1244_p7, %p1243_p6 }
  0x33   :  { %p1246_p9 = pnand %p1245_p8, %p1239_p5 }
  0x35   :  { %1249 = shalt.err (!%p1246_p9)
}
  0x36   :  { %94 = dma.hbm_to_vmem [thread:$0]  %s1719_s7, 256, %s89_s19, [#allocation12], %s1372_s20, %s1372_s20, %s1373_s21  }
  0x37   :  { %s1250_s17 = scalar_lea.hbm %s1712_s0, 128 }
  0x38   :  { %p1251_p10 = scmp.ne.s32.totalorder %s1712_s0, %s1250_s17  ;;  %p1254_p11 = scmp.lt.u32.totalorder %s1250_s17, %s1712_s0 }
  0x3a   :  { %p1256_p12 = pnand %p1254_p11, %p1251_p10 }
  0x3c   :  { %1259 = shalt.err (!%p1256_p12)
}
  0x3d   :  { %s1260_s27 = scalar_lea.vmem %s1490_s23, 128  ;;  %p1265_p0 = scmp.lt.s32.totalorder %s1490_s23, %s1490_s23 }
  0x3e   :  { %p1261_p13 = scmp.ne.s32.totalorder %s1490_s23, %s1260_s27  ;;  %p1266_p1 = scmp.lt.s32.totalorder %s1260_s27, %s1260_s27 }
  0x40   :  { %p1267_p2 = por %p1266_p1, %p1265_p0 }
  0x42   :  { %p1268_p3 = pnand %p1267_p2, %p1261_p13 }
  0x44   :  { %1271 = shalt.err (!%p1268_p3)
}
  0x45   :  { %34 = dma.hbm_to_vmem [thread:$0]  %s1712_s0, 128, %s1490_s23, [#allocation3], %s1372_s20, %s1372_s20, %s1373_s21  }
  0x46   :  { %s1376_s29 = smov [#allocation7]   ;;  %s1377_s14 = smov [#allocation10]  }
  0x47   :  { %s54_s30 = sshll.u32 %s1376_s29, 4  ;;  %s79_s15 = sshll.u32 %s1377_s14, 4  ;;  %s55_s30 = int_to_ptr.vmem [resolvable:$true] %s54_s30  ;;  %s80_s15 = int_to_ptr.vmem [resolvable:$true] %s79_s15 }
  0x48   :  { %s1272_s16 = scalar_lea.hbm %s1715_s3, 256 }
  0x49   :  { %p1273_p4 = scmp.ne.s32.totalorder %s1715_s3, %s1272_s16  ;;  %p1276_p5 = scmp.lt.u32.totalorder %s1272_s16, %s1715_s3 }
  0x4b   :  { %p1278_p6 = pnand %p1276_p5, %p1273_p4 }
  0x4d   :  { %1281 = shalt.err (!%p1278_p6)
}
  0x4e   :  { %s1282_s0 = scalar_lea.vmem %s55_s30, 256  ;;  %p1287_p8 = scmp.lt.s32.totalorder %s55_s30, %s55_s30 }
  0x4f   :  { %p1283_p7 = scmp.ne.s32.totalorder %s55_s30, %s1282_s0  ;;  %p1288_p9 = scmp.lt.s32.totalorder %s1282_s0, %s1282_s0 }
  0x51   :  { %p1289_p10 = por %p1288_p9, %p1287_p8 }
  0x53   :  { %p1290_p11 = pnand %p1289_p10, %p1283_p7 }
  0x55   :  { %1293 = shalt.err (!%p1290_p11)
}
  0x56   :  { %60 = dma.hbm_to_vmem [thread:$0]  %s1715_s3, 256, %s55_s30, [#allocation6], %s1372_s20, %s1372_s20, %s1373_s21  }
  0x57   :  { %s1294_s27 = scalar_lea.hbm %s1718_s6, 16 }
  0x58   :  { %p1295_p12 = scmp.ne.s32.totalorder %s1718_s6, %s1294_s27  ;;  %p1298_p13 = scmp.lt.u32.totalorder %s1294_s27, %s1718_s6 }
  0x5a   :  { %p1300_p0 = pnand %p1298_p13, %p1295_p12 }
  0x5c   :  { %1303 = shalt.err (!%p1300_p0)
}
  0x5d   :  { %s1304_s4 = scalar_lea.vmem %s80_s15, 16  ;;  %s1308_s28 = scalar_lea.vmem %s80_s15, 32 }
  0x5e   :  { %p1305_p1 = scmp.ne.s32.totalorder %s80_s15, %s1304_s4  ;;  %p1309_p2 = scmp.lt.s32.totalorder %s80_s15, %s80_s15 }
  0x5f   :  { %p1310_p3 = scmp.lt.s32.totalorder %s1308_s28, %s1304_s4 }
  0x61   :  { %p1311_p4 = por %p1310_p3, %p1309_p2 }
  0x63   :  { %p1312_p5 = pnand %p1311_p4, %p1305_p1 }
  0x65   :  { %1315 = shalt.err (!%p1312_p5)
}
  0x66   :  { %82 = dma.hbm_to_vmem [thread:$0]  %s1718_s6, 16, %s80_s15, [#allocation9]  }
  0x67   :  { %s1378_s21 = smov [#allocation13]   ;;  %s1316_s26 = scalar_lea.hbm %s1720_s8, 16 }
  0x68   :  { %s101_s30 = sshll.u32 %s1378_s21, 4  ;;  %p1317_p6 = scmp.ne.s32.totalorder %s1720_s8, %s1316_s26  ;;  %s102_s30 = int_to_ptr.vmem [resolvable:$true] %s101_s30 }
  0x69   :  { %p1320_p7 = scmp.lt.u32.totalorder %s1316_s26, %s1720_s8 }
  0x6b   :  { %p1322_p8 = pnand %p1320_p7, %p1317_p6 }
  0x6d   :  { %1325 = shalt.err (!%p1322_p8)
}
  0x6e   :  { %s1326_s22 = scalar_lea.vmem %s102_s30, 16  ;;  %s1330_s6 = scalar_lea.vmem %s102_s30, 32 }
  0x6f   :  { %p1327_p9 = scmp.ne.s32.totalorder %s102_s30, %s1326_s22  ;;  %p1331_p10 = scmp.lt.s32.totalorder %s102_s30, %s102_s30 }
  0x70   :  { %p1332_p11 = scmp.lt.s32.totalorder %s1330_s6, %s1326_s22 }
  0x72   :  { %p1333_p12 = por %p1332_p11, %p1331_p10 }
  0x74   :  { %p1334_p13 = pnand %p1333_p12, %p1327_p9 }
  0x76   :  { %1337 = shalt.err (!%p1334_p13)
}
  0x77   :  { %104 = dma.hbm_to_vmem [thread:$0]  %s1720_s8, 16, %s102_s30, [#allocation12]  }
  0x78   :  { %1360 = dma.done.wait [#allocation3], 128  }
  0x79   :  { %1361 = vsyncadd [#allocation3], 4294967168 }
  0x7a   :  { %1362 = dma.done.wait [#allocation6], 384  }
  0x7b   :  { %1363 = vsyncadd [#allocation6], 4294966912 }
  0x7c   :  { %1364 = dma.done.wait [#allocation9], 32  }
  0x7d   :  { %1365 = vsyncadd [#allocation9], 4294967264 }
  0x7e   :  { %1366 = dma.done.wait [#allocation12], 272  }
  0x7f   :  { %1367 = vsyncadd [#allocation12], 4294967024  ;;  %v1379_v0 = vmov 0.0   ;;  %vm1380_vm0 = vmmov 0   ;;  %v1153_v1 = vld [vmem:[%s1717_s5] sm:$0xff]   ;;  %v1154_v2 = vld [vmem:[%s1717_s5 + $0x8] sm:$0xff]  }
  0x80   :  { %1062 = vmatprep.subr.bf16.mxu1 %v1379_v0  ;;  %1054 = vmatprep.subr.bf16.mxu0 %v1379_v0  ;;  %v1155_v3 = vld [vmem:[#allocation7] sm:$0xff]   ;;  %v1157_v4 = vld [vmem:[#allocation7 + $0x8] sm:$0xff]   ;;  %v1156_v5 = vld [vmem:[#allocation2] sm:$0xff]   ;;  %vm167_vm1 = vcmask 261120   ;;  %vm368_vm2 = vcmask 130048   ;;  %s1381_s5 = smov 112  }
  0x81   :  { %1066 = vmatprep.mubr.msk.bf16.mxu1 %vm1380_vm0, %v1379_v0  ;;  %1058 = vmatprep.mubr.msk.bf16.mxu0 %vm1380_vm0, %v1379_v0  ;;  %v1158_v6 = vld [vmem:[#allocation11] sm:$0xff]   ;;  %v1159_v7 = vld [vmem:[#allocation11 + $0x8] sm:$0xff]   ;;  %v997_v9 = vld [vmem:[#allocation10] ss:$0 sm:$0xff]  ;;  %vm489_vm3 = vcmask 1043456   ;;  %vm461_vm4 = vcmask 64512  }
  0x82   :  { %1063 = vmatpush3.bf16.msra.mxu1 %v1153_v1  ;;  %1055 = vmatpush3.bf16.msra.mxu0 %v1155_v3  ;;  %v1590_v8 = vld [vmem:[#allocation5] sm:$0xff]   ;;  %v992_v14 = vld [vmem:[#allocation8] ss:$0 sm:$0xff]  ;;  %v1001_v29 = vld [vmem:[#allocation13] ss:$0 sm:$0xff]  ;;  %s1382_s26 = smov [#allocation14]  }
  0x83   :  { %1064 = vmatprep.subr.bf16.mxu1 %v1379_v0  ;;  %1056 = vmatprep.subr.bf16.mxu0 %v1379_v0  ;;  %v1620_v40 = vld [vmem:[%s1714_s2] ss:$0 sm:$0xff]  ;;  %v1625_v42 = vld [vmem:[%s1714_s2 + $0x1] ss:$0 sm:$0xff]  ;;  %s977_s17 = sshll.u32 %s1382_s26, 4  ;;  %s978_s17 = int_to_ptr.vmem [resolvable:$true] %s977_s17 }
  0x84   :  { %s1338_s18 = scalar_lea.vmem %s978_s17, 256  ;;  %p1343_p1 = scmp.lt.s32.totalorder %s978_s17, %s978_s17 }
  0x85   :  { %p1339_p0 = scmp.ne.s32.totalorder %s978_s17, %s1338_s18  ;;  %p1344_p2 = scmp.lt.s32.totalorder %s1338_s18, %s1338_s18 }
  0x86   :  { %1065 = vmatpush3.bf16.msra.mxu1 %v1154_v2  ;;  %1057 = vmatpush3.bf16.msra.mxu0 %v1157_v4 }
  0x87   :  { %1078 = vmatprep.subr.bf16.mxu1 %v1379_v0  ;;  %1070 = vmatprep.subr.bf16.mxu0 %v1379_v0  ;;  %p1345_p3 = por %p1344_p2, %p1343_p1 }
  0x89   :  { %1067 = vmatmul.mubr.msk.bf16.vlgmr.msra.gmra.mrb[0].mxu1 %vm167_vm1, %v1156_v5  ;;  %1059 = vmatmul.mubr.msk.bf16.vlgmr.msra.gmra.mrb[0].mxu0 %vm167_vm1, %v1156_v5  ;;  %p1346_p4 = pnand %p1345_p3, %p1339_p0 }
  0x8a   :  { %1080 = vmatprep.mubr.msk.bf16.mxu1 %vm1380_vm0, %v1379_v0  ;;  %1071 = vmatpush3.bf16.msra.mxu0 %v1158_v6 }
  0x8b   :  { %1074 = vmatprep.mubr.msk.bf16.mxu0 %vm1380_vm0, %v1379_v0  ;;  %1072 = vmatprep.subr.bf16.mxu0 %v1379_v0 }
  0x8e   :  { %1073 = vmatpush3.bf16.msra.mxu0 %v1159_v7 }
  0x8f   :  { %1084 = vmatprep.subr.bf16.mxu0 %v1379_v0 }
  0x91   :  { %1075 = vmatmul.mubr.msk.bf16.vlgmr.msra.gmra.mrb[4].mxu0 %vm167_vm1, %v1590_v8 }
  0x92   :  { %1086 = vmatprep.mubr.msk.bf16.mxu0 %vm1380_vm0, %v1379_v0 }
 0x15c   :  { %v269_v10 = vpop.f32.mrb[0].mxu1  ;;  %v205_v15 = vpop.f32.mrb[0].mxu0 }
 0x15d   :  { %v270_v11 = vadd.f32 %v997_v9, %v269_v10  ;;  %v1068_v12 = vpop.f32.mrb[1].mxu1  ;;  %v1060_v19 = vpop.f32.mrb[1].mxu0  ;;  %v206_v23 = vadd.f32 %v992_v14, %v205_v15 }
 0x15e   :  { %v272_v13 = vpop.f32.mrb[2].mxu1  ;;  %v208_v20 = vpop.f32.mrb[2].mxu0 }
 0x15f   :  { %v352_v16 = vpack.c.bf16 %v270_v11, %v270_v11  ;;  %v273_v17 = vadd.f32 %v997_v9, %v272_v13  ;;  %v1069_v18 = vpop.f32.mrb[3].mxu1  ;;  %v1061_v24 = vpop.f32.mrb[3].mxu0  ;;  %v350_v26 = vpack.c.bf16 %v206_v23, %v206_v23  ;;  %v209_v27 = vadd.f32 %v992_v14, %v208_v20 }
 0x161   :  { %v373_v21 = vsel %vm368_vm2, %v352_v16, 0  ;;  %v353_v22 = vpack.c.bf16 %v273_v17, %v273_v17  ;;  %v351_v28 = vpack.c.bf16 %v209_v27, %v209_v27 }
 0x162   :  { %1079 = vmatpush3.bf16.xpose.msra.mxu1 %v373_v21 }
 0x163   :  { %v419_v25 = vsel %vm368_vm2, %v353_v22, 0  ;;  %638 = vrot.lane.b32.xlu1 %v353_v22, %s1381_s5  ;;  %1090 = vmatprep.subr.bf16.mxu1 %v1379_v0 }
 0x164   :  { %1085 = vmatpush3.bf16.xpose.msra.mxu0 %v419_v25  ;;  %v341_v30 = vpop.f32.mrb[4].mxu0 }
 0x165   :  { %1096 = vmatprep.subr.bf16.mxu0 %v1379_v0  ;;  %v342_v31 = vadd.f32 %v1001_v29, %v341_v30  ;;  %v1076_v32 = vpop.f32.mrb[5].mxu0 }
 0x166   :  { %v344_v33 = vpop.f32.mrb[6].mxu0 }
 0x167   :  { %v1607_v34 = vpack.c.bf16 %v342_v31, %v342_v31  ;;  %v345_v35 = vadd.f32 %v1001_v29, %v344_v33  ;;  %v1077_v36 = vpop.f32.mrb[7].mxu0 }
 0x169   :  { %1081 = vmatmul.mubr.msk.bf16.vlgmr.msra.gmra.mrb[4].mxu1 %vm368_vm2, %v350_v26  ;;  %v491_v37 = vsel %vm489_vm3, %v1607_v34, 0  ;;  %v1611_v38 = vpack.c.bf16 %v345_v35, %v345_v35 }
 0x16a   :  { %1092 = vmatprep.mubr.msk.bf16.mxu1 %vm1380_vm0, %v1379_v0  ;;  %1091 = vmatpush3.bf16.msra.mxu1 %v491_v37 }
 0x16b   :  { %1087 = vmatmul.mubr.msk.bf16.vlgmr.msra.gmra.mrb[8].mxu0 %vm368_vm2, %v351_v28  ;;  %v537_v39 = vsel %vm489_vm3, %v1611_v38, 0  ;;  %1102 = vmatprep.subr.bf16.mxu1 %v1379_v0 }
 0x16c   :  { %1098 = vmatprep.mubr.msk.bf16.mxu0 %vm1380_vm0, %v1379_v0  ;;  %1097 = vmatpush3.bf16.msra.mxu0 %v537_v39 }
 0x16d   :  { %1108 = vmatprep.subr.bf16.mxu0 %v1379_v0 }
 0x1d5   :  { %v639_v1 = vpop.permute.xlu1 %638 }
 0x1d6   :  { %v644_v13 = vsel %vm368_vm2, %v639_v1, 0 }
 0x23c   :  { %v409_v41 = vpop.f32.mrb[4].mxu1 }
 0x23d   :  { %v410_v43 = vadd.f32 %v1620_v40, %v409_v41  ;;  %v1082_v44 = vpop.f32.mrb[5].mxu1 }
 0x23e   :  { %v412_v45 = vpop.f32.mrb[6].mxu1  ;;  %v455_v46 = vpop.f32.mrb[8].mxu0 }
 0x23f   :  { %v456_v47 = vadd.f32 %v1625_v42, %v455_v46  ;;  %v1083_v48 = vpop.f32.mrb[7].mxu1  ;;  %v1088_v49 = vpop.f32.mrb[9].mxu0  ;;  %v462_v50 = vsel %vm461_vm4, %v410_v43, -inf }
 0x240   :  { %463 = vmax.xlane.f32.xlu0 %v462_v50  ;;  %v458_v51 = vpop.f32.mrb[10].mxu0 }
 0x241   :  { %v1089_v52 = vpop.f32.mrb[11].mxu0  ;;  %v465_v53 = vsel %vm461_vm4, %v456_v47, -inf }
 0x244   :  { %466 = vmax.xlane.f32.xlu0 %v465_v53 }
 0x25a   :  { %586 = vrot.lane.b32.xlu0 %v352_v16, %s1381_s5 }
 0x2cd   :  { %v464_v54 = vpop.xlane.xlu0 %463 }
 0x2ce   :  { %v468_v55 = vsub.f32 %v410_v43, %v464_v54 }
 0x2d0   :  { %v470_v56 = vmul.f32 1.442695, %v468_v55 }
 0x2d1   :  { %v467_v57 = vpop.xlane.xlu0 %466 }
 0x2d2   :  { %1164 = vpow2.f32 %v470_v56  ;;  %v469_v58 = vsub.f32 %v456_v47, %v467_v57 }
 0x2d4   :  { %v472_v59 = vmul.f32 1.442695, %v469_v58 }
 0x2d5   :  { %v587_v6 = vpop.permute.xlu0 %586 }
 0x2d6   :  { %1166 = vpow2.f32 %v472_v59  ;;  %v592_v10 = vsel %vm368_vm2, %v587_v6, 0 }
 0x2dc   :  { %v1165_v60 = vpop.eup %1164 }
 0x2dd   :  { %v474_v61 = vsel %vm461_vm4, %v1165_v60, 0.0 }
 0x2de   :  { %475 = vadd.xlane.f32.xlu1 %v474_v61 }
 0x2e0   :  { %v1167_v62 = vpop.eup %1166 }
 0x2e1   :  { %v477_v63 = vsel %vm461_vm4, %v1167_v62, 0.0 }
 0x2e2   :  { %478 = vadd.xlane.f32.xlu1 %v477_v63 }
 0x2f3   :  { %583 = vrot.lane.b32.xlu1 %v350_v26, %s1381_s5 }
 0x2f7   :  { %635 = vrot.lane.b32.xlu1 %v351_v28, %s1381_s5 }
 0x36b   :  { %v476_v2 = vpop.xlane.xlu1 %475 }
 0x36c   :  { %1168 = vrcp.f32 %v476_v2 }
 0x36f   :  { %v479_v3 = vpop.xlane.xlu1 %478 }
 0x370   :  { %1170 = vrcp.f32 %v479_v3 }
 0x373   :  { %v584_v14 = vpop.permute.xlu1 %583 }
 0x376   :  { %v1169_v4 = vpop.eup %1168 }
 0x377   :  { %v482_v5 = vmul.f32 %v1169_v4, %v1165_v60  ;;  %v636_v15 = vpop.permute.xlu1 %635  ;;  %v1162_v60 = vld [vmem:[%s1721_s9 + $0x8] sm:$0xff]  }
 0x379   :  { %v484_v7 = vpack.c.bf16 %v482_v5, %v482_v5 }
 0x37a   :  { %v1171_v9 = vpop.eup %1170 }
 0x37b   :  { %v483_v11 = vmul.f32 %v1171_v9, %v1167_v62  ;;  %1093 = vmatmul.mubr.msk.bf16.vlgmr.msra.gmra.mrb[8].mxu1 %vm461_vm4, %v484_v7 }
 0x37c   :  { %1103 = vmatpush3.bf16.xpose.msra.mxu1 %v592_v10  ;;  %1104 = vmatprep.mubr.msk.bf16.mxu1 %vm1380_vm0, %v1379_v0 }
 0x37d   :  { %v485_v12 = vpack.c.bf16 %v483_v11, %v483_v11  ;;  %1114 = vmatprep.subr.bf16.mxu1 %v1379_v0 }
 0x37f   :  { %1099 = vmatmul.mubr.msk.bf16.vlgmr.msra.gmra.mrb[12].mxu0 %vm461_vm4, %v485_v12  ;;  %v1022_v12 = vld [vmem:[%s1722_s10] ss:$0 sm:$0xff] }
 0x380   :  { %1109 = vmatpush3.bf16.xpose.msra.mxu0 %v644_v13  ;;  %1110 = vmatprep.mubr.msk.bf16.mxu0 %vm1380_vm0, %v1379_v0 }
 0x381   :  { %1120 = vmatprep.subr.bf16.mxu0 %v1379_v0 }
 0x383   :  { %1105 = vmatmul.mubr.msk.bf16.vlgmr.msra.gmra.mrb[12].mxu1 %vm368_vm2, %v584_v14 }
 0x384   :  { %1116 = vmatprep.mubr.msk.bf16.mxu1 %vm1380_vm0, %v1379_v0 }
 0x387   :  { %1111 = vmatmul.mubr.msk.bf16.vlgmr.msra.gmra.mrb[16].mxu0 %vm368_vm2, %v636_v15  ;;  %v921_v15 = vunpack.c.l.bf16 %v1590_v8 }
 0x388   :  { %1122 = vmatprep.mubr.msk.bf16.mxu0 %vm1380_vm0, %v1379_v0 }
 0x44e   :  { %v1652_v16 = vpop.f32.mrb[8].mxu1 }
 0x44f   :  { %v1094_v17 = vpop.f32.mrb[9].mxu1 }
 0x450   :  { %v530_v18 = vpop.f32.mrb[10].mxu1 }
 0x451   :  { %v1095_v19 = vpop.f32.mrb[11].mxu1 }
 0x452   :  { %v573_v20 = vpop.f32.mrb[12].mxu0 }
 0x453   :  { %v579_v21 = vpack.c.bf16 %v573_v20, %v1652_v16  ;;  %v1100_v22 = vpop.f32.mrb[13].mxu0  ;;  %v922_v20 = vunpack.c.h.bf16 %v1590_v8 }
 0x454   :  { %v576_v23 = vpop.f32.mrb[14].mxu0 }
 0x455   :  { %v1101_v24 = vpop.f32.mrb[15].mxu0 }
 0x456   :  { %v628_v25 = vpop.f32.mrb[12].mxu1 }
 0x457   :  { %v629_v26 = vadd.f32 %v1620_v40, %v628_v25  ;;  %v1106_v27 = vpop.f32.mrb[13].mxu1 }
 0x458   :  { %v631_v28 = vpop.f32.mrb[14].mxu1 }
 0x459   :  { %v1107_v29 = vpop.f32.mrb[15].mxu1  ;;  %v686_v30 = vsel %vm461_vm4, %v629_v26, -inf }
 0x45a   :  { %687 = vmax.xlane.f32.xlu0 %v686_v30  ;;  %v680_v31 = vpop.f32.mrb[16].mxu0 }
 0x45b   :  { %v681_v32 = vadd.f32 %v1625_v42, %v680_v31  ;;  %v1112_v33 = vpop.f32.mrb[17].mxu0 }
 0x45c   :  { %v683_v35 = vpop.f32.mrb[18].mxu0 }
 0x45d   :  { %v1113_v36 = vpop.f32.mrb[19].mxu0  ;;  %v689_v37 = vsel %vm461_vm4, %v681_v32, -inf }
 0x45e   :  { %690 = vmax.xlane.f32.xlu1 %v689_v37 }
 0x46f   :  { %760 = vrot.lane.b32.xlu1 %v1611_v38, %s1381_s5 }
 0x4e7   :  { %v688_v39 = vpop.xlane.xlu0 %687 }
 0x4e8   :  { %v692_v40 = vsub.f32 %v629_v26, %v688_v39 }
 0x4ea   :  { %v694_v41 = vmul.f32 1.442695, %v692_v40 }
 0x4eb   :  { %v691_v43 = vpop.xlane.xlu1 %690 }
 0x4ec   :  { %1172 = vpow2.f32 %v694_v41  ;;  %v693_v44 = vsub.f32 %v681_v32, %v691_v43 }
 0x4ee   :  { %v696_v45 = vmul.f32 1.442695, %v693_v44 }
 0x4ef   :  { %v761_v46 = vpop.permute.xlu1 %760 }
 0x4f0   :  { %1174 = vpow2.f32 %v696_v45  ;;  %v766_v42 = vsel %vm489_vm3, %v761_v46, 0  ;;  %v1023_v45 = vld [vmem:[%s1723_s11] ss:$0 sm:$0xff] }
 0x4f1   :  { %1121 = vmatpush3.bf16.msra.mxu0 %v766_v42 }
 0x4f2   :  { %1132 = vmatprep.subr.bf16.mxu0 %v1379_v0 }
 0x4f6   :  { %v1173_v47 = vpop.eup %1172 }
 0x4f7   :  { %v698_v48 = vsel %vm461_vm4, %v1173_v47, 0.0 }
 0x4f8   :  { %699 = vadd.xlane.f32.xlu0 %v698_v48 }
 0x4fa   :  { %v1175_v49 = vpop.eup %1174 }
 0x4fb   :  { %v701_v38 = vsel %vm461_vm4, %v1175_v49, 0.0 }
 0x4fc   :  { %702 = vadd.xlane.f32.xlu0 %v701_v38 }
 0x512   :  { %711 = vrot.lane.b32.xlu0 %v1607_v34, %s1381_s5  ;;  %v1161_v34 = vld [vmem:[%s1721_s9] sm:$0xff]  }
 0x585   :  { %v700_v50 = vpop.xlane.xlu0 %699 }
 0x586   :  { %1176 = vrcp.f32 %v700_v50 }
 0x589   :  { %v703_v51 = vpop.xlane.xlu0 %702 }
 0x58a   :  { %1178 = vrcp.f32 %v703_v51 }
 0x58d   :  { %v712_v52 = vpop.permute.xlu0 %711 }
 0x58e   :  { %v717_v53 = vsel %vm489_vm3, %v712_v52, 0 }
 0x58f   :  { %1115 = vmatpush3.bf16.msra.mxu1 %v717_v53 }
 0x590   :  { %v1177_v54 = vpop.eup %1176  ;;  %1126 = vmatprep.subr.bf16.mxu1 %v1379_v0 }
 0x591   :  { %v706_v55 = vmul.f32 %v1177_v54, %v1173_v47  ;;  %v1024_v47 = vld [vmem:[%s1724_s12] ss:$0 sm:$0xff] }
 0x593   :  { %v708_v56 = vpack.c.bf16 %v706_v55, %v706_v55 }
 0x594   :  { %v1179_v57 = vpop.eup %1178 }
 0x595   :  { %v707_v58 = vmul.f32 %v1179_v57, %v1175_v49  ;;  %1117 = vmatmul.mubr.msk.bf16.vlgmr.msra.gmra.mrb[16].mxu1 %vm461_vm4, %v708_v56 }
 0x596   :  { %1128 = vmatprep.mubr.msk.bf16.mxu1 %vm1380_vm0, %v1379_v0  ;;  %1127 = vmatpush3.bf16.msra.mxu1 %v1162_v60 }
 0x597   :  { %v709_v59 = vpack.c.bf16 %v707_v58, %v707_v58 }
 0x599   :  { %1123 = vmatmul.mubr.msk.bf16.vlgmr.msra.gmra.mrb[20].mxu0 %vm461_vm4, %v709_v59 }
 0x59a   :  { %1133 = vmatpush3.bf16.msra.mxu0 %v1161_v34  ;;  %1134 = vmatprep.mubr.msk.bf16.mxu0 %vm1380_vm0, %v1379_v0 }
 0x5a1   :  { %1135 = vmatmul.mubr.msk.bf16.vlgmr.msra.gmra.mrb[24].mxu0 %vm368_vm2, %v579_v21 }
 0x668   :  { %v753_v61 = vpop.f32.mrb[16].mxu1 }
 0x669   :  { %v1118_v62 = vpop.f32.mrb[17].mxu1 }
 0x66a   :  { %v756_v63 = vpop.f32.mrb[18].mxu1 }
 0x66b   :  { %v1119_v1 = vpop.f32.mrb[19].mxu1 }
 0x66c   :  { %v802_v2 = vpop.f32.mrb[20].mxu0 }
 0x66d   :  { %v808_v3 = vpack.c.bf16 %v802_v2, %v753_v61  ;;  %v1124_v4 = vpop.f32.mrb[21].mxu0 }
 0x66e   :  { %v805_v5 = vpop.f32.mrb[22].mxu0 }
 0x66f   :  { %v1125_v6 = vpop.f32.mrb[23].mxu0  ;;  %1129 = vmatmul.mubr.msk.bf16.vlgmr.msra.gmra.mrb[20].mxu1 %vm368_vm2, %v808_v3 }
 0x674   :  { %v905_v7 = vpop.f32.mrb[24].mxu0 }
 0x675   :  { %v1136_v0 = vpop.f32.mrb[25].mxu0 }
 0x676   :  { %v908_v9 = vpop.f32.mrb[26].mxu0 }
 0x677   :  { %v1137_v10 = vpop.f32.mrb[27].mxu0 }
 0x742   :  { %v855_v11 = vpop.f32.mrb[20].mxu1 }
 0x743   :  { %v906_v13 = vadd.f32 %v905_v7, %v855_v11  ;;  %v1130_v14 = vpop.f32.mrb[21].mxu1 }
 0x744   :  { %v858_v16 = vpop.f32.mrb[22].mxu1 }
 0x745   :  { %v919_v17 = vadd.f32 %v1022_v12, %v906_v13  ;;  %v909_v18 = vadd.f32 %v908_v9, %v858_v16  ;;  %v1131_v19 = vpop.f32.mrb[23].mxu1 }
 0x747   :  { %v920_v21 = vadd.f32 %v1022_v12, %v909_v18  ;;  %v923_v22 = vadd.f32 %v921_v15, %v919_v17 }
 0x749   :  { %v925_v23 = vsel %vm167_vm1, %v923_v22, 0.0  ;;  %v924_v24 = vadd.f32 %v922_v20, %v920_v21 }
 0x74a   :  { %926 = vadd.xlane.f32.xlu1 %v925_v23 }
 0x74b   :  { %v928_v25 = vsel %vm167_vm1, %v924_v24, 0.0 }
 0x74c   :  { %929 = vadd.xlane.f32.xlu0 %v928_v25 }
 0x7d7   :  { %v927_v26 = vpop.xlane.xlu1 %926 }
 0x7d8   :  { %v932_v27 = vmul.f32 0.03125, %v927_v26 }
 0x7d9   :  { %v930_v28 = vpop.xlane.xlu0 %929 }
 0x7da   :  { %v934_v29 = vsub.f32 %v923_v22, %v932_v27  ;;  %v933_v30 = vmul.f32 0.03125, %v930_v28 }
 0x7dc   :  { %v935_v31 = vsub.f32 %v924_v24, %v933_v30  ;;  %v936_v32 = vmul.f32 %v934_v29, %v934_v29 }
 0x7de   :  { %v938_v33 = vsel %vm167_vm1, %v936_v32, 0.0  ;;  %v937_v35 = vmul.f32 %v935_v31, %v935_v31 }
 0x7df   :  { %939 = vadd.xlane.f32.xlu0 %v938_v33 }
 0x7e0   :  { %v941_v8 = vsel %vm167_vm1, %v937_v35, 0.0 }
 0x7e1   :  { %942 = vadd.xlane.f32.xlu1 %v941_v8 }
 0x86c   :  { %v940_v36 = vpop.xlane.xlu0 %939 }
 0x86d   :  { %v944_v37 = vmul.f32 0.03125, %v940_v36 }
 0x86e   :  { %v943_v39 = vpop.xlane.xlu1 %942 }
 0x86f   :  { %v946_v40 = vadd.f32 1e-12, %v944_v37  ;;  %v945_v41 = vmul.f32 0.03125, %v943_v39 }
 0x871   :  { %1180 = vrsqrt.f32 %v946_v40  ;;  %v947_v43 = vadd.f32 1e-12, %v945_v41 }
 0x873   :  { %1182 = vrsqrt.f32 %v947_v43 }
 0x87b   :  { %v1181_v44 = vpop.eup %1180 }
 0x87c   :  { %v950_v46 = vmul.f32 %v1181_v44, %v934_v29 }
 0x87d   :  { %v1183_v42 = vpop.eup %1182 }
 0x87e   :  { %v959_v48 = vmul.f32 %v1023_v45, %v950_v46  ;;  %v951_v49 = vmul.f32 %v1183_v42, %v935_v31 }
 0x880   :  { %v960_v38 = vmul.f32 %v1023_v45, %v951_v49  ;;  %v968_v50 = vadd.f32 %v1024_v47, %v959_v48 }
 0x882   :  { %v969_v51 = vadd.f32 %v1024_v47, %v960_v38  ;;  %970 = vst.msk [vmem:[#allocation14] sm:$0xff] %vm167_vm1, %v968_v50 }
 0x884   :  { %971 = vst.msk [vmem:[#allocation14 + $0x8] sm:$0xff] %vm167_vm1, %v969_v51 }
 0x885   :  { %1349 = shalt.err (!%p1346_p4)
}
 0x886   :  { %s1350_s0 = scalar_lea.hbm %s1725_s13, 256 }
 0x887   :  { %p1351_p5 = scmp.ne.s32.totalorder %s1725_s13, %s1350_s0  ;;  %p1354_p6 = scmp.lt.u32.totalorder %s1350_s0, %s1725_s13 }
 0x889   :  { %p1356_p7 = pnand %p1354_p6, %p1351_p5 }
 0x88b   :  { %1359 = shalt.err (!%p1356_p7)
}
 0x88c   :  { %s1383_s24 = smov 128   ;;  %s1384_s8 = smov 8  }
 0x88d   :  { %983 = dma.vmem_to_hbm [thread:$0]  %s978_s17, 256, %s1725_s13, [#allocation4], %s1383_s24, %s1383_s24, %s1384_s8  }
 0x88e   :  { %1368 = dma.done.wait [#allocation4], 256  }
 0x88f   :  { %1369 = vsyncadd [#allocation4], 4294967040 }
 0x890   :  { %987 = vsyncpa [#allocation3], 1 }
 0x891   :  { %988 = vsyncpa [#allocation6], 1 }
 0x892   :  { %989 = vsyncpa [#allocation9], 1 }
 0x893   :  { %990 = vsyncpa [#allocation12], 1 }
 0x894   :  { %991 = vsyncpa [#allocation4], 1 }

</bundles_post_ra>
